<compile_context>
chip_gen: v6e
topology: v6e:2x2x1
jax: 0.10.0
libtpu: 0.0.40
codegen_flags: <defaults>
</compile_context>

<pallas_src>
import math
import functools

import jax
import jax.numpy as jnp
import numpy as np
from jax.experimental import pallas as pl
from jax.experimental.pallas import tpu as pltpu

_EPS = 1e-5


# ------------------------------- fused kernel ------------------------------- #

def _ghost_kernel(x_ref, w1_ref, b1_ref, wdw_ref, b2_ref, o_ref, *,
                  c_in, init_ch, cheap_ch, dw, pad, tile_h, img_h, img_w):
    # x_ref  : (1, c_in, H+2p, W+2p) VMEM  -- halo-padded input image (resident per n)
    # w1_ref : (init_ch, c_in)       SMEM  -- 1x1 weights with BN scale folded in
    # b1_ref : (init_ch,)            SMEM  -- BN shift
    # wdw_ref: (max(cheap_ch,1), dw*dw) SMEM -- depthwise taps with BN scale folded in
    # b2_ref : (max(cheap_ch,1),)    SMEM  -- BN shift
    # o_ref  : (1, c_out, tile_h, W) VMEM  -- output row-tile (primary + cheap concat)
    thw = tile_h + 2 * pad            # window rows incl. halo
    wp = img_w + 2 * pad              # padded width

    row0 = pl.program_id(1) * tile_h  # start row of this tile in padded coordinates
    if tile_h % 8 == 0:
        row0 = pl.multiple_of(row0, 8)

    # Validity mask: positions outside the real image must contribute exact zeros to
    # the depthwise conv (zero padding is applied to the *activated* primary output).
    if pad > 0:
        rows = jax.lax.broadcasted_iota(jnp.int32, (thw, wp), 0) + row0
        cols = jax.lax.broadcasted_iota(jnp.int32, (thw, wp), 1)
        valid = ((rows >= pad) & (rows < img_h + pad) &
                 (cols >= pad) & (cols < img_w + pad))

    # ---- primary 1x1 conv + BN + ReLU6 (VPU scalar*plane madds; channels tiny) ----
    xw = [x_ref[0, c, pl.ds(row0, thw), :] for c in range(c_in)]   # (thw, wp) each
    yp = []
    for o in range(init_ch):
        acc = xw[0] * w1_ref[o, 0]
        for c in range(1, c_in):
            acc = acc + xw[c] * w1_ref[o, c]
        v = jnp.clip(acc + b1_ref[o], 0.0, 6.0)                    # BN shift + ReLU6
        if pad > 0:
            v = jnp.where(valid, v, 0.0)                           # zero halo/padding
        o_ref[0, o, :, :] = v[pad:pad + tile_h, pad:pad + img_w].astype(o_ref.dtype)
        yp.append(v)

    # ---- cheap grouped depthwise dw x dw conv + BN + ReLU6 ------------------------
    if cheap_ch > 0:
        cpg = cheap_ch // init_ch                 # output channels per source channel
        for cc in range(cheap_ch):
            src = yp[cc // cpg]                   # replicated source plane (in vregs)
            acc = None
            for i in range(dw):
                for j in range(dw):
                    t = src[i:i + tile_h, j:j + img_w] * wdw_ref[cc, i * dw + j]
                    acc = t if acc is None else acc + t
            yc = jnp.clip(acc + b2_ref[cc], 0.0, 6.0)
            o_ref[0, init_ch + cc, :, :] = yc.astype(o_ref.dtype)


def _pick_tile_h(h):
    for t in (64, 32, 16, 8):
        if h % t == 0 and h // t >= 2:
            return t
    return h


def _bn_fold(gamma, beta, mean, var):
    scale = gamma * jax.lax.rsqrt(var + _EPS)
    shift = beta - mean * scale
    return scale, shift


# ------------------------------- forward glue ------------------------------- #

def ghost_conv_forward(x, params, *, c_in, c_out, k=1, s=1, dw_size=3, ratio=2):
    """GhostConv forward. x: (N, c_in, H, W) float32 -> (N, c_out, H_out, W_out)."""
    assert k == 1, "only the default k=1 (pointwise primary conv) is implemented"
    # TODO(synk): general k>1 primary conv would need an im2col / wider-halo path.
    init_ch = min(math.ceil(c_out / ratio), c_out)
    cheap_ch = c_out - init_ch
    if cheap_ch > 0:
        # PyTorch's grouped Conv2d itself requires out_channels % groups == 0.
        assert cheap_ch % init_ch == 0, "grouped conv requires cheap_ch % init_ch == 0"

    if s > 1:  # k=1, pad=k//2=0 => stride is pure spatial subsampling
        # TODO(synk): fold the stride into the input DMA (strided pl.ds) instead.
        x = x[:, :, ::s, ::s]

    N, C, H, W = x.shape
    assert C == c_in
    x = x.astype(jnp.float32)

    pad = dw_size // 2 if cheap_ch > 0 else 0
    tile_h = _pick_tile_h(H)
    n_h = H // tile_h

    # Halo rows/cols so in-kernel window reads stay in bounds; content is masked in
    # the kernel, zeros chosen. This is the only wrapper-side copy (of the raw input).
    xp = jnp.pad(x, ((0, 0), (0, 0), (pad, pad), (pad, pad))) if pad > 0 else x
    hp, wp = H + 2 * pad, W + 2 * pad

    # Fold BatchNorm (eval mode) into conv weights (scale) and bias (shift).
    s1, b1 = _bn_fold(params["bn1_gamma"], params["bn1_beta"],
                      params["bn1_mean"], params["bn1_var"])
    w1f = params["w1"].reshape(init_ch, c_in) * s1[:, None]
    if cheap_ch > 0:
        s2, b2 = _bn_fold(params["bn2_gamma"], params["bn2_beta"],
                          params["bn2_mean"], params["bn2_var"])
        wdwf = params["w_dw"].reshape(cheap_ch, dw_size * dw_size) * s2[:, None]
    else:
        wdwf = jnp.zeros((1, dw_size * dw_size), jnp.float32)
        b2 = jnp.zeros((1,), jnp.float32)

    kernel = functools.partial(
        _ghost_kernel, c_in=c_in, init_ch=init_ch, cheap_ch=cheap_ch,
        dw=dw_size, pad=pad, tile_h=tile_h, img_h=H, img_w=W)

    smem = pl.BlockSpec(memory_space=pltpu.MemorySpace.SMEM)
    y = pl.pallas_call(
        kernel,
        out_shape=jax.ShapeDtypeStruct((N, c_out, H, W), jnp.float32),
        grid=(N, n_h),
        in_specs=[
            # whole padded image resident per batch element (constant along h axis)
            pl.BlockSpec((1, c_in, hp, wp), lambda n, h: (n, 0, 0, 0)),
            smem, smem, smem, smem,
        ],
        out_specs=pl.BlockSpec((1, c_out, tile_h, W), lambda n, h: (n, 0, h, 0)),
        compiler_params=pltpu.CompilerParams(
            dimension_semantics=("parallel", "parallel"),
            vmem_limit_bytes=32 * 1024 * 1024),
    )(xp,
      w1f.astype(jnp.float32), b1.astype(jnp.float32),
      wdwf.astype(jnp.float32), b2.astype(jnp.float32))
    return y


# ----------------------- deterministic parameter init ----------------------- #

def init_params(key, c_in, c_out, k=1, dw_size=3, ratio=2):
    init_ch = min(math.ceil(c_out / ratio), c_out)
    cheap_ch = c_out - init_ch
    ks = jax.random.split(key, 10)
    p = {
        "w1": 0.1 * jax.random.normal(ks[0], (init_ch, c_in, k, k), jnp.float32),
        "bn1_gamma": 1.0 + 0.1 * jax.random.normal(ks[1], (init_ch,), jnp.float32),
        "bn1_beta": 0.1 * jax.random.normal(ks[2], (init_ch,), jnp.float32),
        "bn1_mean": 0.1 * jax.random.normal(ks[3], (init_ch,), jnp.float32),
        "bn1_var": 0.5 + jnp.abs(jax.random.normal(ks[4], (init_ch,), jnp.float32)),
    }
    if cheap_ch > 0:
        p.update({
            "w_dw": 0.1 * jax.random.normal(ks[5], (cheap_ch, 1, dw_size, dw_size),
                                            jnp.float32),
            "bn2_gamma": 1.0 + 0.1 * jax.random.normal(ks[6], (cheap_ch,), jnp.float32),
            "bn2_beta": 0.1 * jax.random.normal(ks[7], (cheap_ch,), jnp.float32),
            "bn2_mean": 0.1 * jax.random.normal(ks[8], (cheap_ch,), jnp.float32),
            "bn2_var": 0.5 + jnp.abs(jax.random.normal(ks[9], (cheap_ch,), jnp.float32)),
        })
    return p


# ------------------------------ pure-JAX reference --------------------------- #

def ghost_conv_reference(x, params, *, c_in, c_out, k=1, s=1, dw_size=3, ratio=2):
    init_ch = min(math.ceil(c_out / ratio), c_out)
    cheap_ch = c_out - init_ch

    def bn_relu6(y, g, b, m, v):
        sc = (g / jnp.sqrt(v + _EPS)).reshape(1, -1, 1, 1)
        sh = (b - m * (g / jnp.sqrt(v + _EPS))).reshape(1, -1, 1, 1)
        return jnp.clip(y * sc + sh, 0.0, 6.0)

    pad = k // 2
    y = jax.lax.conv_general_dilated(
        x, params["w1"], window_strides=(s, s),
        padding=[(pad, pad), (pad, pad)],
        dimension_numbers=("NCHW", "OIHW", "NCHW"),
        precision=jax.lax.Precision.HIGHEST)
    yp = bn_relu6(y, params["bn1_gamma"], params["bn1_beta"],
                  params["bn1_mean"], params["bn1_var"])

    if cheap_ch > 0:
        padc = dw_size // 2
        yc = jax.lax.conv_general_dilated(
            yp, params["w_dw"], window_strides=(1, 1),
            padding=[(padc, padc), (padc, padc)],
            dimension_numbers=("NCHW", "OIHW", "NCHW"),
            feature_group_count=init_ch,
            precision=jax.lax.Precision.HIGHEST)
        yc = bn_relu6(yc, params["bn2_gamma"], params["bn2_beta"],
                      params["bn2_mean"], params["bn2_var"])
        return jnp.concatenate([yp, yc], axis=1)
    return yp


# ------------------------------------ main ------------------------------------ #

if __name__ == "__main__":
    key = jax.random.PRNGKey(0)
    kx, kp = jax.random.split(key)

    N, c_in, H, W = 2, 4, 16, 16
    c_out = 8  # ratio=2 -> init_ch=4, cheap_ch=4 (pure depthwise cheap branch)

    x = jax.random.normal(kx, (N, c_in, H, W), jnp.float32)
    params = init_params(kp, c_in, c_out)

    y = ghost_conv_forward(x, params, c_in=c_in, c_out=c_out)
    y = jax.block_until_ready(y)

    y_ref = ghost_conv_reference(x, params, c_in=c_in, c_out=c_out)
    assert y.shape == (N, c_out, H, W), y.shape
    np.testing.assert_allclose(np.asarray(y), np.asarray(y_ref), rtol=1e-4, atol=1e-4)

    print("KERNEL_OK")
</pallas_src>

<mosaic_0001>
module attributes {stable_mosaic.version = 11 : i64} {
  func.func @_ghost_kernel(%arg0: i32, %arg1: i32, %arg2: memref<1x4x18x18xf32, #tpu.memory_space<vmem>>, %arg3: memref<4x4xf32, #tpu.memory_space<smem>>, %arg4: memref<4xf32, #tpu.memory_space<smem>>, %arg5: memref<4x9xf32, #tpu.memory_space<smem>>, %arg6: memref<4xf32, #tpu.memory_space<smem>>, %arg7: memref<1x8x8x16xf32, #tpu.memory_space<vmem>>) attributes {dimension_semantics = [#tpu.dimension_semantics<parallel>, #tpu.dimension_semantics<parallel>], iteration_bounds = array<i64: 2, 2>, scalar_prefetch = 0 : i64, scratch_operands = 0 : i64, tpu.core_type = #tpu.core_type<tc>, window_params = [{transform_indices = @transform_0, window_bounds = array<i64: 1, 4, 18, 18>}, {transform_indices = @transform_1, window_bounds = array<i64: 4, 4>}, {transform_indices = @transform_2, window_bounds = array<i64: 4>}, {transform_indices = @transform_3, window_bounds = array<i64: 4, 9>}, {transform_indices = @transform_4, window_bounds = array<i64: 4>}, {transform_indices = @transform_5, window_bounds = array<i64: 1, 8, 8, 16>}]} {
    %c8_i32 = arith.constant 8 : i32
    %0 = arith.muli %arg1, %c8_i32 : i32
    %1 = tpu.assume_multiple %0, 8 : i32
    %2 = tpu.iota {dimensions = array<i32: 0>} : vector<10x18xi32>
    %3 = vector.broadcast %1 : i32 to vector<10x18xi32>
    %4 = arith.addi %2, %3 : vector<10x18xi32>
    %5 = tpu.iota {dimensions = array<i32: 1>} : vector<10x18xi32>
    %c1_i32 = arith.constant 1 : i32
    %6 = vector.broadcast %c1_i32 : i32 to vector<10x18xi32>
    %7 = arith.cmpi sge, %4, %6 : vector<10x18xi32>
    %c17_i32 = arith.constant 17 : i32
    %8 = vector.broadcast %c17_i32 : i32 to vector<10x18xi32>
    %9 = arith.cmpi slt, %4, %8 : vector<10x18xi32>
    %10 = arith.andi %7, %9 : vector<10x18xi1>
    %c1_i32_0 = arith.constant 1 : i32
    %11 = vector.broadcast %c1_i32_0 : i32 to vector<10x18xi32>
    %12 = arith.cmpi sge, %5, %11 : vector<10x18xi32>
    %13 = arith.andi %10, %12 : vector<10x18xi1>
    %c17_i32_1 = arith.constant 17 : i32
    %14 = vector.broadcast %c17_i32_1 : i32 to vector<10x18xi32>
    %15 = arith.cmpi slt, %5, %14 : vector<10x18xi32>
    %16 = arith.andi %13, %15 : vector<10x18xi1>
    %c0 = arith.constant 0 : index
    %c0_2 = arith.constant 0 : index
    %17 = arith.index_cast %1 : i32 to index
    %c0_3 = arith.constant 0 : index
    %18 = vector.load %arg2[%c0, %c0_2, %17, %c0_3] : memref<1x4x18x18xf32, #tpu.memory_space<vmem>>, vector<1x1x10x18xf32>
    %19 = vector.shape_cast %18 : vector<1x1x10x18xf32> to vector<10x18xf32>
    %c0_4 = arith.constant 0 : index
    %c1 = arith.constant 1 : index
    %20 = arith.index_cast %1 : i32 to index
    %c0_5 = arith.constant 0 : index
    %21 = vector.load %arg2[%c0_4, %c1, %20, %c0_5] : memref<1x4x18x18xf32, #tpu.memory_space<vmem>>, vector<1x1x10x18xf32>
    %22 = vector.shape_cast %21 : vector<1x1x10x18xf32> to vector<10x18xf32>
    %c0_6 = arith.constant 0 : index
    %c2 = arith.constant 2 : index
    %23 = arith.index_cast %1 : i32 to index
    %c0_7 = arith.constant 0 : index
    %24 = vector.load %arg2[%c0_6, %c2, %23, %c0_7] : memref<1x4x18x18xf32, #tpu.memory_space<vmem>>, vector<1x1x10x18xf32>
    %25 = vector.shape_cast %24 : vector<1x1x10x18xf32> to vector<10x18xf32>
    %c0_8 = arith.constant 0 : index
    %c3 = arith.constant 3 : index
    %26 = arith.index_cast %1 : i32 to index
    %c0_9 = arith.constant 0 : index
    %27 = vector.load %arg2[%c0_8, %c3, %26, %c0_9] : memref<1x4x18x18xf32, #tpu.memory_space<vmem>>, vector<1x1x10x18xf32>
    %28 = vector.shape_cast %27 : vector<1x1x10x18xf32> to vector<10x18xf32>
    %c0_10 = arith.constant 0 : index
    %c0_11 = arith.constant 0 : index
    %29 = memref.load %arg3[%c0_10, %c0_11] : memref<4x4xf32, #tpu.memory_space<smem>>
    %30 = vector.broadcast %29 : f32 to vector<10x18xf32>
    %31 = arith.mulf %19, %30 : vector<10x18xf32>
    %c0_12 = arith.constant 0 : index
    %c1_13 = arith.constant 1 : index
    %32 = memref.load %arg3[%c0_12, %c1_13] : memref<4x4xf32, #tpu.memory_space<smem>>
    %33 = vector.broadcast %32 : f32 to vector<10x18xf32>
    %34 = arith.mulf %22, %33 : vector<10x18xf32>
    %35 = arith.addf %31, %34 : vector<10x18xf32>
    %c0_14 = arith.constant 0 : index
    %c2_15 = arith.constant 2 : index
    %36 = memref.load %arg3[%c0_14, %c2_15] : memref<4x4xf32, #tpu.memory_space<smem>>
    %37 = vector.broadcast %36 : f32 to vector<10x18xf32>
    %38 = arith.mulf %25, %37 : vector<10x18xf32>
    %39 = arith.addf %35, %38 : vector<10x18xf32>
    %c0_16 = arith.constant 0 : index
    %c3_17 = arith.constant 3 : index
    %40 = memref.load %arg3[%c0_16, %c3_17] : memref<4x4xf32, #tpu.memory_space<smem>>
    %41 = vector.broadcast %40 : f32 to vector<10x18xf32>
    %42 = arith.mulf %28, %41 : vector<10x18xf32>
    %43 = arith.addf %39, %42 : vector<10x18xf32>
    %c0_18 = arith.constant 0 : index
    %44 = memref.load %arg4[%c0_18] : memref<4xf32, #tpu.memory_space<smem>>
    %45 = vector.broadcast %44 : f32 to vector<10x18xf32>
    %46 = arith.addf %43, %45 : vector<10x18xf32>
    %cst = arith.constant 0.000000e+00 : f32
    %cst_19 = arith.constant 6.000000e+00 : f32
    %47 = vector.broadcast %cst : f32 to vector<10x18xf32>
    %48 = arith.maximumf %47, %46 : vector<10x18xf32>
    %49 = vector.broadcast %cst_19 : f32 to vector<10x18xf32>
    %50 = arith.minimumf %49, %48 : vector<10x18xf32>
    %cst_20 = arith.constant 0.000000e+00 : f32
    %51 = vector.broadcast %cst_20 : f32 to vector<10x18xf32>
    %52 = arith.select %16, %50, %51 : vector<10x18xi1>, vector<10x18xf32>
    %53 = vector.extract_strided_slice %52 {offsets = [1, 1], sizes = [8, 16], strides = [1, 1]} : vector<10x18xf32> to vector<8x16xf32>
    %c0_21 = arith.constant 0 : index
    %c0_22 = arith.constant 0 : index
    %c0_23 = arith.constant 0 : index
    %c0_24 = arith.constant 0 : index
    %54 = vector.load %arg7[%c0_21, %c0_22, %c0_23, %c0_24] : memref<1x8x8x16xf32, #tpu.memory_space<vmem>>, vector<1x1x8x16xf32>
    %55 = vector.shape_cast %54 : vector<1x1x8x16xf32> to vector<8x16xf32>
    %56 = vector.shape_cast %53 : vector<8x16xf32> to vector<1x1x8x16xf32>
    tpu.vector_store %arg7[%c0_21, %c0_22, %c0_23, %c0_24], %56 {strides = array<i32>} : memref<1x8x8x16xf32, #tpu.memory_space<vmem>>, vector<1x1x8x16xf32>,
    %c1_25 = arith.constant 1 : index
    %c0_26 = arith.constant 0 : index
    %57 = memref.load %arg3[%c1_25, %c0_26] : memref<4x4xf32, #tpu.memory_space<smem>>
    %58 = vector.broadcast %57 : f32 to vector<10x18xf32>
    %59 = arith.mulf %19, %58 : vector<10x18xf32>
    %c1_27 = arith.constant 1 : index
    %c1_28 = arith.constant 1 : index
    %60 = memref.load %arg3[%c1_27, %c1_28] : memref<4x4xf32, #tpu.memory_space<smem>>
    %61 = vector.broadcast %60 : f32 to vector<10x18xf32>
    %62 = arith.mulf %22, %61 : vector<10x18xf32>
    %63 = arith.addf %59, %62 : vector<10x18xf32>
    %c1_29 = arith.constant 1 : index
    %c2_30 = arith.constant 2 : index
    %64 = memref.load %arg3[%c1_29, %c2_30] : memref<4x4xf32, #tpu.memory_space<smem>>
    %65 = vector.broadcast %64 : f32 to vector<10x18xf32>
    %66 = arith.mulf %25, %65 : vector<10x18xf32>
    %67 = arith.addf %63, %66 : vector<10x18xf32>
    %c1_31 = arith.constant 1 : index
    %c3_32 = arith.constant 3 : index
    %68 = memref.load %arg3[%c1_31, %c3_32] : memref<4x4xf32, #tpu.memory_space<smem>>
    %69 = vector.broadcast %68 : f32 to vector<10x18xf32>
    %70 = arith.mulf %28, %69 : vector<10x18xf32>
    %71 = arith.addf %67, %70 : vector<10x18xf32>
    %c1_33 = arith.constant 1 : index
    %72 = memref.load %arg4[%c1_33] : memref<4xf32, #tpu.memory_space<smem>>
    %73 = vector.broadcast %72 : f32 to vector<10x18xf32>
    %74 = arith.addf %71, %73 : vector<10x18xf32>
    %cst_34 = arith.constant 0.000000e+00 : f32
    %cst_35 = arith.constant 6.000000e+00 : f32
    %75 = vector.broadcast %cst_34 : f32 to vector<10x18xf32>
    %76 = arith.maximumf %75, %74 : vector<10x18xf32>
    %77 = vector.broadcast %cst_35 : f32 to vector<10x18xf32>
    %78 = arith.minimumf %77, %76 : vector<10x18xf32>
    %cst_36 = arith.constant 0.000000e+00 : f32
    %79 = vector.broadcast %cst_36 : f32 to vector<10x18xf32>
    %80 = arith.select %16, %78, %79 : vector<10x18xi1>, vector<10x18xf32>
    %81 = vector.extract_strided_slice %80 {offsets = [1, 1], sizes = [8, 16], strides = [1, 1]} : vector<10x18xf32> to vector<8x16xf32>
    %c0_37 = arith.constant 0 : index
    %c1_38 = arith.constant 1 : index
    %c0_39 = arith.constant 0 : index
    %c0_40 = arith.constant 0 : index
    %82 = vector.load %arg7[%c0_37, %c1_38, %c0_39, %c0_40] : memref<1x8x8x16xf32, #tpu.memory_space<vmem>>, vector<1x1x8x16xf32>
    %83 = vector.shape_cast %82 : vector<1x1x8x16xf32> to vector<8x16xf32>
    %84 = vector.shape_cast %81 : vector<8x16xf32> to vector<1x1x8x16xf32>
    tpu.vector_store %arg7[%c0_37, %c1_38, %c0_39, %c0_40], %84 {strides = array<i32>} : memref<1x8x8x16xf32, #tpu.memory_space<vmem>>, vector<1x1x8x16xf32>,
    %c2_41 = arith.constant 2 : index
    %c0_42 = arith.constant 0 : index
    %85 = memref.load %arg3[%c2_41, %c0_42] : memref<4x4xf32, #tpu.memory_space<smem>>
    %86 = vector.broadcast %85 : f32 to vector<10x18xf32>
    %87 = arith.mulf %19, %86 : vector<10x18xf32>
    %c2_43 = arith.constant 2 : index
    %c1_44 = arith.constant 1 : index
    %88 = memref.load %arg3[%c2_43, %c1_44] : memref<4x4xf32, #tpu.memory_space<smem>>
    %89 = vector.broadcast %88 : f32 to vector<10x18xf32>
    %90 = arith.mulf %22, %89 : vector<10x18xf32>
    %91 = arith.addf %87, %90 : vector<10x18xf32>
    %c2_45 = arith.constant 2 : index
    %c2_46 = arith.constant 2 : index
    %92 = memref.load %arg3[%c2_45, %c2_46] : memref<4x4xf32, #tpu.memory_space<smem>>
    %93 = vector.broadcast %92 : f32 to vector<10x18xf32>
    %94 = arith.mulf %25, %93 : vector<10x18xf32>
    %95 = arith.addf %91, %94 : vector<10x18xf32>
    %c2_47 = arith.constant 2 : index
    %c3_48 = arith.constant 3 : index
    %96 = memref.load %arg3[%c2_47, %c3_48] : memref<4x4xf32, #tpu.memory_space<smem>>
    %97 = vector.broadcast %96 : f32 to vector<10x18xf32>
    %98 = arith.mulf %28, %97 : vector<10x18xf32>
    %99 = arith.addf %95, %98 : vector<10x18xf32>
    %c2_49 = arith.constant 2 : index
    %100 = memref.load %arg4[%c2_49] : memref<4xf32, #tpu.memory_space<smem>>
    %101 = vector.broadcast %100 : f32 to vector<10x18xf32>
    %102 = arith.addf %99, %101 : vector<10x18xf32>
    %cst_50 = arith.constant 0.000000e+00 : f32
    %cst_51 = arith.constant 6.000000e+00 : f32
    %103 = vector.broadcast %cst_50 : f32 to vector<10x18xf32>
    %104 = arith.maximumf %103, %102 : vector<10x18xf32>
    %105 = vector.broadcast %cst_51 : f32 to vector<10x18xf32>
    %106 = arith.minimumf %105, %104 : vector<10x18xf32>
    %cst_52 = arith.constant 0.000000e+00 : f32
    %107 = vector.broadcast %cst_52 : f32 to vector<10x18xf32>
    %108 = arith.select %16, %106, %107 : vector<10x18xi1>, vector<10x18xf32>
    %109 = vector.extract_strided_slice %108 {offsets = [1, 1], sizes = [8, 16], strides = [1, 1]} : vector<10x18xf32> to vector<8x16xf32>
    %c0_53 = arith.constant 0 : index
    %c2_54 = arith.constant 2 : index
    %c0_55 = arith.constant 0 : index
    %c0_56 = arith.constant 0 : index
    %110 = vector.load %arg7[%c0_53, %c2_54, %c0_55, %c0_56] : memref<1x8x8x16xf32, #tpu.memory_space<vmem>>, vector<1x1x8x16xf32>
    %111 = vector.shape_cast %110 : vector<1x1x8x16xf32> to vector<8x16xf32>
    %112 = vector.shape_cast %109 : vector<8x16xf32> to vector<1x1x8x16xf32>
    tpu.vector_store %arg7[%c0_53, %c2_54, %c0_55, %c0_56], %112 {strides = array<i32>} : memref<1x8x8x16xf32, #tpu.memory_space<vmem>>, vector<1x1x8x16xf32>,
    %c3_57 = arith.constant 3 : index
    %c0_58 = arith.constant 0 : index
    %113 = memref.load %arg3[%c3_57, %c0_58] : memref<4x4xf32, #tpu.memory_space<smem>>
    %114 = vector.broadcast %113 : f32 to vector<10x18xf32>
    %115 = arith.mulf %19, %114 : vector<10x18xf32>
    %c3_59 = arith.constant 3 : index
    %c1_60 = arith.constant 1 : index
    %116 = memref.load %arg3[%c3_59, %c1_60] : memref<4x4xf32, #tpu.memory_space<smem>>
    %117 = vector.broadcast %116 : f32 to vector<10x18xf32>
    %118 = arith.mulf %22, %117 : vector<10x18xf32>
    %119 = arith.addf %115, %118 : vector<10x18xf32>
    %c3_61 = arith.constant 3 : index
    %c2_62 = arith.constant 2 : index
    %120 = memref.load %arg3[%c3_61, %c2_62] : memref<4x4xf32, #tpu.memory_space<smem>>
    %121 = vector.broadcast %120 : f32 to vector<10x18xf32>
    %122 = arith.mulf %25, %121 : vector<10x18xf32>
    %123 = arith.addf %119, %122 : vector<10x18xf32>
    %c3_63 = arith.constant 3 : index
    %c3_64 = arith.constant 3 : index
    %124 = memref.load %arg3[%c3_63, %c3_64] : memref<4x4xf32, #tpu.memory_space<smem>>
    %125 = vector.broadcast %124 : f32 to vector<10x18xf32>
    %126 = arith.mulf %28, %125 : vector<10x18xf32>
    %127 = arith.addf %123, %126 : vector<10x18xf32>
    %c3_65 = arith.constant 3 : index
    %128 = memref.load %arg4[%c3_65] : memref<4xf32, #tpu.memory_space<smem>>
    %129 = vector.broadcast %128 : f32 to vector<10x18xf32>
    %130 = arith.addf %127, %129 : vector<10x18xf32>
    %cst_66 = arith.constant 0.000000e+00 : f32
    %cst_67 = arith.constant 6.000000e+00 : f32
    %131 = vector.broadcast %cst_66 : f32 to vector<10x18xf32>
    %132 = arith.maximumf %131, %130 : vector<10x18xf32>
    %133 = vector.broadcast %cst_67 : f32 to vector<10x18xf32>
    %134 = arith.minimumf %133, %132 : vector<10x18xf32>
    %cst_68 = arith.constant 0.000000e+00 : f32
    %135 = vector.broadcast %cst_68 : f32 to vector<10x18xf32>
    %136 = arith.select %16, %134, %135 : vector<10x18xi1>, vector<10x18xf32>
    %137 = vector.extract_strided_slice %136 {offsets = [1, 1], sizes = [8, 16], strides = [1, 1]} : vector<10x18xf32> to vector<8x16xf32>
    %c0_69 = arith.constant 0 : index
    %c3_70 = arith.constant 3 : index
    %c0_71 = arith.constant 0 : index
    %c0_72 = arith.constant 0 : index
    %138 = vector.load %arg7[%c0_69, %c3_70, %c0_71, %c0_72] : memref<1x8x8x16xf32, #tpu.memory_space<vmem>>, vector<1x1x8x16xf32>
    %139 = vector.shape_cast %138 : vector<1x1x8x16xf32> to vector<8x16xf32>
    %140 = vector.shape_cast %137 : vector<8x16xf32> to vector<1x1x8x16xf32>
    tpu.vector_store %arg7[%c0_69, %c3_70, %c0_71, %c0_72], %140 {strides = array<i32>} : memref<1x8x8x16xf32, #tpu.memory_space<vmem>>, vector<1x1x8x16xf32>,
    %141 = vector.extract_strided_slice %52 {offsets = [0, 0], sizes = [8, 16], strides = [1, 1]} : vector<10x18xf32> to vector<8x16xf32>
    %c0_73 = arith.constant 0 : index
    %c0_74 = arith.constant 0 : index
    %142 = memref.load %arg5[%c0_73, %c0_74] : memref<4x9xf32, #tpu.memory_space<smem>>
    %143 = vector.broadcast %142 : f32 to vector<8x16xf32>
    %144 = arith.mulf %141, %143 : vector<8x16xf32>
    %145 = vector.extract_strided_slice %52 {offsets = [0, 1], sizes = [8, 16], strides = [1, 1]} : vector<10x18xf32> to vector<8x16xf32>
    %c0_75 = arith.constant 0 : index
    %c1_76 = arith.constant 1 : index
    %146 = memref.load %arg5[%c0_75, %c1_76] : memref<4x9xf32, #tpu.memory_space<smem>>
    %147 = vector.broadcast %146 : f32 to vector<8x16xf32>
    %148 = arith.mulf %145, %147 : vector<8x16xf32>
    %149 = arith.addf %144, %148 : vector<8x16xf32>
    %150 = vector.extract_strided_slice %52 {offsets = [0, 2], sizes = [8, 16], strides = [1, 1]} : vector<10x18xf32> to vector<8x16xf32>
    %c0_77 = arith.constant 0 : index
    %c2_78 = arith.constant 2 : index
    %151 = memref.load %arg5[%c0_77, %c2_78] : memref<4x9xf32, #tpu.memory_space<smem>>
    %152 = vector.broadcast %151 : f32 to vector<8x16xf32>
    %153 = arith.mulf %150, %152 : vector<8x16xf32>
    %154 = arith.addf %149, %153 : vector<8x16xf32>
    %155 = vector.extract_strided_slice %52 {offsets = [1, 0], sizes = [8, 16], strides = [1, 1]} : vector<10x18xf32> to vector<8x16xf32>
    %c0_79 = arith.constant 0 : index
    %c3_80 = arith.constant 3 : index
    %156 = memref.load %arg5[%c0_79, %c3_80] : memref<4x9xf32, #tpu.memory_space<smem>>
    %157 = vector.broadcast %156 : f32 to vector<8x16xf32>
    %158 = arith.mulf %155, %157 : vector<8x16xf32>
    %159 = arith.addf %154, %158 : vector<8x16xf32>
    %160 = vector.extract_strided_slice %52 {offsets = [1, 1], sizes = [8, 16], strides = [1, 1]} : vector<10x18xf32> to vector<8x16xf32>
    %c0_81 = arith.constant 0 : index
    %c4 = arith.constant 4 : index
    %161 = memref.load %arg5[%c0_81, %c4] : memref<4x9xf32, #tpu.memory_space<smem>>
    %162 = vector.broadcast %161 : f32 to vector<8x16xf32>
    %163 = arith.mulf %160, %162 : vector<8x16xf32>
    %164 = arith.addf %159, %163 : vector<8x16xf32>
    %165 = vector.extract_strided_slice %52 {offsets = [1, 2], sizes = [8, 16], strides = [1, 1]} : vector<10x18xf32> to vector<8x16xf32>
    %c0_82 = arith.constant 0 : index
    %c5 = arith.constant 5 : index
    %166 = memref.load %arg5[%c0_82, %c5] : memref<4x9xf32, #tpu.memory_space<smem>>
    %167 = vector.broadcast %166 : f32 to vector<8x16xf32>
    %168 = arith.mulf %165, %167 : vector<8x16xf32>
    %169 = arith.addf %164, %168 : vector<8x16xf32>
    %170 = vector.extract_strided_slice %52 {offsets = [2, 0], sizes = [8, 16], strides = [1, 1]} : vector<10x18xf32> to vector<8x16xf32>
    %c0_83 = arith.constant 0 : index
    %c6 = arith.constant 6 : index
    %171 = memref.load %arg5[%c0_83, %c6] : memref<4x9xf32, #tpu.memory_space<smem>>
    %172 = vector.broadcast %171 : f32 to vector<8x16xf32>
    %173 = arith.mulf %170, %172 : vector<8x16xf32>
    %174 = arith.addf %169, %173 : vector<8x16xf32>
    %175 = vector.extract_strided_slice %52 {offsets = [2, 1], sizes = [8, 16], strides = [1, 1]} : vector<10x18xf32> to vector<8x16xf32>
    %c0_84 = arith.constant 0 : index
    %c7 = arith.constant 7 : index
    %176 = memref.load %arg5[%c0_84, %c7] : memref<4x9xf32, #tpu.memory_space<smem>>
    %177 = vector.broadcast %176 : f32 to vector<8x16xf32>
    %178 = arith.mulf %175, %177 : vector<8x16xf32>
    %179 = arith.addf %174, %178 : vector<8x16xf32>
    %180 = vector.extract_strided_slice %52 {offsets = [2, 2], sizes = [8, 16], strides = [1, 1]} : vector<10x18xf32> to vector<8x16xf32>
    %c0_85 = arith.constant 0 : index
    %c8 = arith.constant 8 : index
    %181 = memref.load %arg5[%c0_85, %c8] : memref<4x9xf32, #tpu.memory_space<smem>>
    %182 = vector.broadcast %181 : f32 to vector<8x16xf32>
    %183 = arith.mulf %180, %182 : vector<8x16xf32>
    %184 = arith.addf %179, %183 : vector<8x16xf32>
    %c0_86 = arith.constant 0 : index
    %185 = memref.load %arg6[%c0_86] : memref<4xf32, #tpu.memory_space<smem>>
    %186 = vector.broadcast %185 : f32 to vector<8x16xf32>
    %187 = arith.addf %184, %186 : vector<8x16xf32>
    %cst_87 = arith.constant 0.000000e+00 : f32
    %cst_88 = arith.constant 6.000000e+00 : f32
    %188 = vector.broadcast %cst_87 : f32 to vector<8x16xf32>
    %189 = arith.maximumf %188, %187 : vector<8x16xf32>
    %190 = vector.broadcast %cst_88 : f32 to vector<8x16xf32>
    %191 = arith.minimumf %190, %189 : vector<8x16xf32>
    %c0_89 = arith.constant 0 : index
    %c4_90 = arith.constant 4 : index
    %c0_91 = arith.constant 0 : index
    %c0_92 = arith.constant 0 : index
    %192 = vector.load %arg7[%c0_89, %c4_90, %c0_91, %c0_92] : memref<1x8x8x16xf32, #tpu.memory_space<vmem>>, vector<1x1x8x16xf32>
    %193 = vector.shape_cast %192 : vector<1x1x8x16xf32> to vector<8x16xf32>
    %194 = vector.shape_cast %191 : vector<8x16xf32> to vector<1x1x8x16xf32>
    tpu.vector_store %arg7[%c0_89, %c4_90, %c0_91, %c0_92], %194 {strides = array<i32>} : memref<1x8x8x16xf32, #tpu.memory_space<vmem>>, vector<1x1x8x16xf32>,
    %195 = vector.extract_strided_slice %80 {offsets = [0, 0], sizes = [8, 16], strides = [1, 1]} : vector<10x18xf32> to vector<8x16xf32>
    %c1_93 = arith.constant 1 : index
    %c0_94 = arith.constant 0 : index
    %196 = memref.load %arg5[%c1_93, %c0_94] : memref<4x9xf32, #tpu.memory_space<smem>>
    %197 = vector.broadcast %196 : f32 to vector<8x16xf32>
    %198 = arith.mulf %195, %197 : vector<8x16xf32>
    %199 = vector.extract_strided_slice %80 {offsets = [0, 1], sizes = [8, 16], strides = [1, 1]} : vector<10x18xf32> to vector<8x16xf32>
    %c1_95 = arith.constant 1 : index
    %c1_96 = arith.constant 1 : index
    %200 = memref.load %arg5[%c1_95, %c1_96] : memref<4x9xf32, #tpu.memory_space<smem>>
    %201 = vector.broadcast %200 : f32 to vector<8x16xf32>
    %202 = arith.mulf %199, %201 : vector<8x16xf32>
    %203 = arith.addf %198, %202 : vector<8x16xf32>
    %204 = vector.extract_strided_slice %80 {offsets = [0, 2], sizes = [8, 16], strides = [1, 1]} : vector<10x18xf32> to vector<8x16xf32>
    %c1_97 = arith.constant 1 : index
    %c2_98 = arith.constant 2 : index
    %205 = memref.load %arg5[%c1_97, %c2_98] : memref<4x9xf32, #tpu.memory_space<smem>>
    %206 = vector.broadcast %205 : f32 to vector<8x16xf32>
    %207 = arith.mulf %204, %206 : vector<8x16xf32>
    %208 = arith.addf %203, %207 : vector<8x16xf32>
    %209 = vector.extract_strided_slice %80 {offsets = [1, 0], sizes = [8, 16], strides = [1, 1]} : vector<10x18xf32> to vector<8x16xf32>
    %c1_99 = arith.constant 1 : index
    %c3_100 = arith.constant 3 : index
    %210 = memref.load %arg5[%c1_99, %c3_100] : memref<4x9xf32, #tpu.memory_space<smem>>
    %211 = vector.broadcast %210 : f32 to vector<8x16xf32>
    %212 = arith.mulf %209, %211 : vector<8x16xf32>
    %213 = arith.addf %208, %212 : vector<8x16xf32>
    %214 = vector.extract_strided_slice %80 {offsets = [1, 1], sizes = [8, 16], strides = [1, 1]} : vector<10x18xf32> to vector<8x16xf32>
    %c1_101 = arith.constant 1 : index
    %c4_102 = arith.constant 4 : index
    %215 = memref.load %arg5[%c1_101, %c4_102] : memref<4x9xf32, #tpu.memory_space<smem>>
    %216 = vector.broadcast %215 : f32 to vector<8x16xf32>
    %217 = arith.mulf %214, %216 : vector<8x16xf32>
    %218 = arith.addf %213, %217 : vector<8x16xf32>
    %219 = vector.extract_strided_slice %80 {offsets = [1, 2], sizes = [8, 16], strides = [1, 1]} : vector<10x18xf32> to vector<8x16xf32>
    %c1_103 = arith.constant 1 : index
    %c5_104 = arith.constant 5 : index
    %220 = memref.load %arg5[%c1_103, %c5_104] : memref<4x9xf32, #tpu.memory_space<smem>>
    %221 = vector.broadcast %220 : f32 to vector<8x16xf32>
    %222 = arith.mulf %219, %221 : vector<8x16xf32>
    %223 = arith.addf %218, %222 : vector<8x16xf32>
    %224 = vector.extract_strided_slice %80 {offsets = [2, 0], sizes = [8, 16], strides = [1, 1]} : vector<10x18xf32> to vector<8x16xf32>
    %c1_105 = arith.constant 1 : index
    %c6_106 = arith.constant 6 : index
    %225 = memref.load %arg5[%c1_105, %c6_106] : memref<4x9xf32, #tpu.memory_space<smem>>
    %226 = vector.broadcast %225 : f32 to vector<8x16xf32>
    %227 = arith.mulf %224, %226 : vector<8x16xf32>
    %228 = arith.addf %223, %227 : vector<8x16xf32>
    %229 = vector.extract_strided_slice %80 {offsets = [2, 1], sizes = [8, 16], strides = [1, 1]} : vector<10x18xf32> to vector<8x16xf32>
    %c1_107 = arith.constant 1 : index
    %c7_108 = arith.constant 7 : index
    %230 = memref.load %arg5[%c1_107, %c7_108] : memref<4x9xf32, #tpu.memory_space<smem>>
    %231 = vector.broadcast %230 : f32 to vector<8x16xf32>
    %232 = arith.mulf %229, %231 : vector<8x16xf32>
    %233 = arith.addf %228, %232 : vector<8x16xf32>
    %234 = vector.extract_strided_slice %80 {offsets = [2, 2], sizes = [8, 16], strides = [1, 1]} : vector<10x18xf32> to vector<8x16xf32>
    %c1_109 = arith.constant 1 : index
    %c8_110 = arith.constant 8 : index
    %235 = memref.load %arg5[%c1_109, %c8_110] : memref<4x9xf32, #tpu.memory_space<smem>>
    %236 = vector.broadcast %235 : f32 to vector<8x16xf32>
    %237 = arith.mulf %234, %236 : vector<8x16xf32>
    %238 = arith.addf %233, %237 : vector<8x16xf32>
    %c1_111 = arith.constant 1 : index
    %239 = memref.load %arg6[%c1_111] : memref<4xf32, #tpu.memory_space<smem>>
    %240 = vector.broadcast %239 : f32 to vector<8x16xf32>
    %241 = arith.addf %238, %240 : vector<8x16xf32>
    %cst_112 = arith.constant 0.000000e+00 : f32
    %cst_113 = arith.constant 6.000000e+00 : f32
    %242 = vector.broadcast %cst_112 : f32 to vector<8x16xf32>
    %243 = arith.maximumf %242, %241 : vector<8x16xf32>
    %244 = vector.broadcast %cst_113 : f32 to vector<8x16xf32>
    %245 = arith.minimumf %244, %243 : vector<8x16xf32>
    %c0_114 = arith.constant 0 : index
    %c5_115 = arith.constant 5 : index
    %c0_116 = arith.constant 0 : index
    %c0_117 = arith.constant 0 : index
    %246 = vector.load %arg7[%c0_114, %c5_115, %c0_116, %c0_117] : memref<1x8x8x16xf32, #tpu.memory_space<vmem>>, vector<1x1x8x16xf32>
    %247 = vector.shape_cast %246 : vector<1x1x8x16xf32> to vector<8x16xf32>
    %248 = vector.shape_cast %245 : vector<8x16xf32> to vector<1x1x8x16xf32>
    tpu.vector_store %arg7[%c0_114, %c5_115, %c0_116, %c0_117], %248 {strides = array<i32>} : memref<1x8x8x16xf32, #tpu.memory_space<vmem>>, vector<1x1x8x16xf32>,
    %249 = vector.extract_strided_slice %108 {offsets = [0, 0], sizes = [8, 16], strides = [1, 1]} : vector<10x18xf32> to vector<8x16xf32>
    %c2_118 = arith.constant 2 : index
    %c0_119 = arith.constant 0 : index
    %250 = memref.load %arg5[%c2_118, %c0_119] : memref<4x9xf32, #tpu.memory_space<smem>>
    %251 = vector.broadcast %250 : f32 to vector<8x16xf32>
    %252 = arith.mulf %249, %251 : vector<8x16xf32>
    %253 = vector.extract_strided_slice %108 {offsets = [0, 1], sizes = [8, 16], strides = [1, 1]} : vector<10x18xf32> to vector<8x16xf32>
    %c2_120 = arith.constant 2 : index
    %c1_121 = arith.constant 1 : index
    %254 = memref.load %arg5[%c2_120, %c1_121] : memref<4x9xf32, #tpu.memory_space<smem>>
    %255 = vector.broadcast %254 : f32 to vector<8x16xf32>
    %256 = arith.mulf %253, %255 : vector<8x16xf32>
    %257 = arith.addf %252, %256 : vector<8x16xf32>
    %258 = vector.extract_strided_slice %108 {offsets = [0, 2], sizes = [8, 16], strides = [1, 1]} : vector<10x18xf32> to vector<8x16xf32>
    %c2_122 = arith.constant 2 : index
    %c2_123 = arith.constant 2 : index
    %259 = memref.load %arg5[%c2_122, %c2_123] : memref<4x9xf32, #tpu.memory_space<smem>>
    %260 = vector.broadcast %259 : f32 to vector<8x16xf32>
    %261 = arith.mulf %258, %260 : vector<8x16xf32>
    %262 = arith.addf %257, %261 : vector<8x16xf32>
    %263 = vector.extract_strided_slice %108 {offsets = [1, 0], sizes = [8, 16], strides = [1, 1]} : vector<10x18xf32> to vector<8x16xf32>
    %c2_124 = arith.constant 2 : index
    %c3_125 = arith.constant 3 : index
    %264 = memref.load %arg5[%c2_124, %c3_125] : memref<4x9xf32, #tpu.memory_space<smem>>
    %265 = vector.broadcast %264 : f32 to vector<8x16xf32>
    %266 = arith.mulf %263, %265 : vector<8x16xf32>
    %267 = arith.addf %262, %266 : vector<8x16xf32>
    %268 = vector.extract_strided_slice %108 {offsets = [1, 1], sizes = [8, 16], strides = [1, 1]} : vector<10x18xf32> to vector<8x16xf32>
    %c2_126 = arith.constant 2 : index
    %c4_127 = arith.constant 4 : index
    %269 = memref.load %arg5[%c2_126, %c4_127] : memref<4x9xf32, #tpu.memory_space<smem>>
    %270 = vector.broadcast %269 : f32 to vector<8x16xf32>
    %271 = arith.mulf %268, %270 : vector<8x16xf32>
    %272 = arith.addf %267, %271 : vector<8x16xf32>
    %273 = vector.extract_strided_slice %108 {offsets = [1, 2], sizes = [8, 16], strides = [1, 1]} : vector<10x18xf32> to vector<8x16xf32>
    %c2_128 = arith.constant 2 : index
    %c5_129 = arith.constant 5 : index
    %274 = memref.load %arg5[%c2_128, %c5_129] : memref<4x9xf32, #tpu.memory_space<smem>>
    %275 = vector.broadcast %274 : f32 to vector<8x16xf32>
    %276 = arith.mulf %273, %275 : vector<8x16xf32>
    %277 = arith.addf %272, %276 : vector<8x16xf32>
    %278 = vector.extract_strided_slice %108 {offsets = [2, 0], sizes = [8, 16], strides = [1, 1]} : vector<10x18xf32> to vector<8x16xf32>
    %c2_130 = arith.constant 2 : index
    %c6_131 = arith.constant 6 : index
    %279 = memref.load %arg5[%c2_130, %c6_131] : memref<4x9xf32, #tpu.memory_space<smem>>
    %280 = vector.broadcast %279 : f32 to vector<8x16xf32>
    %281 = arith.mulf %278, %280 : vector<8x16xf32>
    %282 = arith.addf %277, %281 : vector<8x16xf32>
    %283 = vector.extract_strided_slice %108 {offsets = [2, 1], sizes = [8, 16], strides = [1, 1]} : vector<10x18xf32> to vector<8x16xf32>
    %c2_132 = arith.constant 2 : index
    %c7_133 = arith.constant 7 : index
    %284 = memref.load %arg5[%c2_132, %c7_133] : memref<4x9xf32, #tpu.memory_space<smem>>
    %285 = vector.broadcast %284 : f32 to vector<8x16xf32>
    %286 = arith.mulf %283, %285 : vector<8x16xf32>
    %287 = arith.addf %282, %286 : vector<8x16xf32>
    %288 = vector.extract_strided_slice %108 {offsets = [2, 2], sizes = [8, 16], strides = [1, 1]} : vector<10x18xf32> to vector<8x16xf32>
    %c2_134 = arith.constant 2 : index
    %c8_135 = arith.constant 8 : index
    %289 = memref.load %arg5[%c2_134, %c8_135] : memref<4x9xf32, #tpu.memory_space<smem>>
    %290 = vector.broadcast %289 : f32 to vector<8x16xf32>
    %291 = arith.mulf %288, %290 : vector<8x16xf32>
    %292 = arith.addf %287, %291 : vector<8x16xf32>
    %c2_136 = arith.constant 2 : index
    %293 = memref.load %arg6[%c2_136] : memref<4xf32, #tpu.memory_space<smem>>
    %294 = vector.broadcast %293 : f32 to vector<8x16xf32>
    %295 = arith.addf %292, %294 : vector<8x16xf32>
    %cst_137 = arith.constant 0.000000e+00 : f32
    %cst_138 = arith.constant 6.000000e+00 : f32
    %296 = vector.broadcast %cst_137 : f32 to vector<8x16xf32>
    %297 = arith.maximumf %296, %295 : vector<8x16xf32>
    %298 = vector.broadcast %cst_138 : f32 to vector<8x16xf32>
    %299 = arith.minimumf %298, %297 : vector<8x16xf32>
    %c0_139 = arith.constant 0 : index
    %c6_140 = arith.constant 6 : index
    %c0_141 = arith.constant 0 : index
    %c0_142 = arith.constant 0 : index
    %300 = vector.load %arg7[%c0_139, %c6_140, %c0_141, %c0_142] : memref<1x8x8x16xf32, #tpu.memory_space<vmem>>, vector<1x1x8x16xf32>
    %301 = vector.shape_cast %300 : vector<1x1x8x16xf32> to vector<8x16xf32>
    %302 = vector.shape_cast %299 : vector<8x16xf32> to vector<1x1x8x16xf32>
    tpu.vector_store %arg7[%c0_139, %c6_140, %c0_141, %c0_142], %302 {strides = array<i32>} : memref<1x8x8x16xf32, #tpu.memory_space<vmem>>, vector<1x1x8x16xf32>,
    %303 = vector.extract_strided_slice %136 {offsets = [0, 0], sizes = [8, 16], strides = [1, 1]} : vector<10x18xf32> to vector<8x16xf32>
    %c3_143 = arith.constant 3 : index
    %c0_144 = arith.constant 0 : index
    %304 = memref.load %arg5[%c3_143, %c0_144] : memref<4x9xf32, #tpu.memory_space<smem>>
    %305 = vector.broadcast %304 : f32 to vector<8x16xf32>
    %306 = arith.mulf %303, %305 : vector<8x16xf32>
    %307 = vector.extract_strided_slice %136 {offsets = [0, 1], sizes = [8, 16], strides = [1, 1]} : vector<10x18xf32> to vector<8x16xf32>
    %c3_145 = arith.constant 3 : index
    %c1_146 = arith.constant 1 : index
    %308 = memref.load %arg5[%c3_145, %c1_146] : memref<4x9xf32, #tpu.memory_space<smem>>
    %309 = vector.broadcast %308 : f32 to vector<8x16xf32>
    %310 = arith.mulf %307, %309 : vector<8x16xf32>
    %311 = arith.addf %306, %310 : vector<8x16xf32>
    %312 = vector.extract_strided_slice %136 {offsets = [0, 2], sizes = [8, 16], strides = [1, 1]} : vector<10x18xf32> to vector<8x16xf32>
    %c3_147 = arith.constant 3 : index
    %c2_148 = arith.constant 2 : index
    %313 = memref.load %arg5[%c3_147, %c2_148] : memref<4x9xf32, #tpu.memory_space<smem>>
    %314 = vector.broadcast %313 : f32 to vector<8x16xf32>
    %315 = arith.mulf %312, %314 : vector<8x16xf32>
    %316 = arith.addf %311, %315 : vector<8x16xf32>
    %317 = vector.extract_strided_slice %136 {offsets = [1, 0], sizes = [8, 16], strides = [1, 1]} : vector<10x18xf32> to vector<8x16xf32>
    %c3_149 = arith.constant 3 : index
    %c3_150 = arith.constant 3 : index
    %318 = memref.load %arg5[%c3_149, %c3_150] : memref<4x9xf32, #tpu.memory_space<smem>>
    %319 = vector.broadcast %318 : f32 to vector<8x16xf32>
    %320 = arith.mulf %317, %319 : vector<8x16xf32>
    %321 = arith.addf %316, %320 : vector<8x16xf32>
    %322 = vector.extract_strided_slice %136 {offsets = [1, 1], sizes = [8, 16], strides = [1, 1]} : vector<10x18xf32> to vector<8x16xf32>
    %c3_151 = arith.constant 3 : index
    %c4_152 = arith.constant 4 : index
    %323 = memref.load %arg5[%c3_151, %c4_152] : memref<4x9xf32, #tpu.memory_space<smem>>
    %324 = vector.broadcast %323 : f32 to vector<8x16xf32>
    %325 = arith.mulf %322, %324 : vector<8x16xf32>
    %326 = arith.addf %321, %325 : vector<8x16xf32>
    %327 = vector.extract_strided_slice %136 {offsets = [1, 2], sizes = [8, 16], strides = [1, 1]} : vector<10x18xf32> to vector<8x16xf32>
    %c3_153 = arith.constant 3 : index
    %c5_154 = arith.constant 5 : index
    %328 = memref.load %arg5[%c3_153, %c5_154] : memref<4x9xf32, #tpu.memory_space<smem>>
    %329 = vector.broadcast %328 : f32 to vector<8x16xf32>
    %330 = arith.mulf %327, %329 : vector<8x16xf32>
    %331 = arith.addf %326, %330 : vector<8x16xf32>
    %332 = vector.extract_strided_slice %136 {offsets = [2, 0], sizes = [8, 16], strides = [1, 1]} : vector<10x18xf32> to vector<8x16xf32>
    %c3_155 = arith.constant 3 : index
    %c6_156 = arith.constant 6 : index
    %333 = memref.load %arg5[%c3_155, %c6_156] : memref<4x9xf32, #tpu.memory_space<smem>>
    %334 = vector.broadcast %333 : f32 to vector<8x16xf32>
    %335 = arith.mulf %332, %334 : vector<8x16xf32>
    %336 = arith.addf %331, %335 : vector<8x16xf32>
    %337 = vector.extract_strided_slice %136 {offsets = [2, 1], sizes = [8, 16], strides = [1, 1]} : vector<10x18xf32> to vector<8x16xf32>
    %c3_157 = arith.constant 3 : index
    %c7_158 = arith.constant 7 : index
    %338 = memref.load %arg5[%c3_157, %c7_158] : memref<4x9xf32, #tpu.memory_space<smem>>
    %339 = vector.broadcast %338 : f32 to vector<8x16xf32>
    %340 = arith.mulf %337, %339 : vector<8x16xf32>
    %341 = arith.addf %336, %340 : vector<8x16xf32>
    %342 = vector.extract_strided_slice %136 {offsets = [2, 2], sizes = [8, 16], strides = [1, 1]} : vector<10x18xf32> to vector<8x16xf32>
    %c3_159 = arith.constant 3 : index
    %c8_160 = arith.constant 8 : index
    %343 = memref.load %arg5[%c3_159, %c8_160] : memref<4x9xf32, #tpu.memory_space<smem>>
    %344 = vector.broadcast %343 : f32 to vector<8x16xf32>
    %345 = arith.mulf %342, %344 : vector<8x16xf32>
    %346 = arith.addf %341, %345 : vector<8x16xf32>
    %c3_161 = arith.constant 3 : index
    %347 = memref.load %arg6[%c3_161] : memref<4xf32, #tpu.memory_space<smem>>
    %348 = vector.broadcast %347 : f32 to vector<8x16xf32>
    %349 = arith.addf %346, %348 : vector<8x16xf32>
    %cst_162 = arith.constant 0.000000e+00 : f32
    %cst_163 = arith.constant 6.000000e+00 : f32
    %350 = vector.broadcast %cst_162 : f32 to vector<8x16xf32>
    %351 = arith.maximumf %350, %349 : vector<8x16xf32>
    %352 = vector.broadcast %cst_163 : f32 to vector<8x16xf32>
    %353 = arith.minimumf %352, %351 : vector<8x16xf32>
    %c0_164 = arith.constant 0 : index
    %c7_165 = arith.constant 7 : index
    %c0_166 = arith.constant 0 : index
    %c0_167 = arith.constant 0 : index
    %354 = vector.load %arg7[%c0_164, %c7_165, %c0_166, %c0_167] : memref<1x8x8x16xf32, #tpu.memory_space<vmem>>, vector<1x1x8x16xf32>
    %355 = vector.shape_cast %354 : vector<1x1x8x16xf32> to vector<8x16xf32>
    %356 = vector.shape_cast %353 : vector<8x16xf32> to vector<1x1x8x16xf32>
    tpu.vector_store %arg7[%c0_164, %c7_165, %c0_166, %c0_167], %356 {strides = array<i32>} : memref<1x8x8x16xf32, #tpu.memory_space<vmem>>, vector<1x1x8x16xf32>,
    return
  }
  func.func @transform_0(%arg0: i32, %arg1: i32) -> (i32, i32, i32, i32) {
    %c0_i32 = arith.constant 0 : i32
    %c0_i32_0 = arith.constant 0 : i32
    %c0_i32_1 = arith.constant 0 : i32
    %c0_i32_2 = arith.constant 0 : i32
    return %arg0, %c0_i32, %c0_i32_0, %c0_i32_1 : i32, i32, i32, i32
  }
  func.func @transform_1(%arg0: i32, %arg1: i32) -> (i32, i32) {
    %c0_i32 = arith.constant 0 : i32
    %c0_i32_0 = arith.constant 0 : i32
    %c0_i32_1 = arith.constant 0 : i32
    return %c0_i32, %c0_i32_0 : i32, i32
  }
  func.func @transform_2(%arg0: i32, %arg1: i32) -> i32 {
    %c0_i32 = arith.constant 0 : i32
    %c0_i32_0 = arith.constant 0 : i32
    return %c0_i32 : i32
  }
  func.func @transform_3(%arg0: i32, %arg1: i32) -> (i32, i32) {
    %c0_i32 = arith.constant 0 : i32
    %c0_i32_0 = arith.constant 0 : i32
    %c0_i32_1 = arith.constant 0 : i32
    return %c0_i32, %c0_i32_0 : i32, i32
  }
  func.func @transform_4(%arg0: i32, %arg1: i32) -> i32 {
    %c0_i32 = arith.constant 0 : i32
    %c0_i32_0 = arith.constant 0 : i32
    return %c0_i32 : i32
  }
  func.func @transform_5(%arg0: i32, %arg1: i32) -> (i32, i32, i32, i32) {
    %c0_i32 = arith.constant 0 : i32
    %c0_i32_0 = arith.constant 0 : i32
    %c0_i32_1 = arith.constant 0 : i32
    return %arg0, %c0_i32, %arg1, %c0_i32_0 : i32, i32, i32, i32
  }
}

</mosaic_0001>

<bundles_post_ra>
// kernel: tpu_custom_call.1
= control target key start
LH: loop header
LB: loop body
LE: loop exit
PB: predicated region body
PF: predicated region fallthrough
CT: control target
= control target key end

     0   :  { %s2157_s0 = inlined_call_operand.vmem [shape: f32[2,4,18,18], index: 0, kind: input, shape index: {}]   ;;  %s2158_s1 = inlined_call_operand.vmem [shape: f32[4,4], index: 1, kind: input, shape index: {}]   ;;  %s2159_s2 = inlined_call_operand.vmem [shape: f32[4], index: 2, kind: input, shape index: {}]   ;;  %s2160_s3 = inlined_call_operand.vmem [shape: f32[4,9], index: 3, kind: input, shape index: {}]   ;;  %s2161_s4 = inlined_call_operand.vmem [shape: f32[4], index: 4, kind: input, shape index: {}]   ;;  %s2162_s5 = inlined_call_operand.hbm [shape: f32[2,8,16,16], index: 5, kind: output, shape index: {}]  }
   0x1   :  { %2169 = sst [smem:[#allocation15_spill]] %s2157_s0 }
   0x2   :  { %2170 = sst [smem:[#allocation16_spill]] %s2158_s1 }
   0x3   :  { %2171 = sst [smem:[#allocation17_spill]] %s2159_s2 }
   0x4   :  { %10 = vsyncpa [#allocation4], 0 }
   0x5   :  { %11 = vsyncpa [#allocation6], 0 }
   0x6   :  { %12 = vsyncpa [#allocation9], 0 }
   0x7   :  { %13 = vsyncpa [#allocation3], 0 }
   0x8   :  { %15 = vsyncpa [#allocation3 + $0x1], 0  ;;  %s1463_s18 = smov 0   ;;  %s1465_s19 = smov 0  }
   0x9   :  { %s1467_s20 = smov 0   ;;  %s1469_s21 = smov 0  }
   0xa   :  { %s1471_s22 = smov 0   ;;  %s1473_s23 = smov 0  }
   0xb   :  { %s1475_s24 = smov 0   ;;  %s1477_s25 = smov 0  }
   0xc LB: > { %s1043_s26 = sadd.s32 4294967295, %s1421_s25   ;;  %s1044_s27 = sadd.s32 4294967294, %s1421_s25   ;;  %s1421_s25 = sphi %s1477_s25, %s21_s25   ;;  %s1417_s24 = sphi %s1475_s24, %s2201_s24   ;;  %s1413_s23 = sphi %s1473_s23, %s2200_s23   ;;  %s1409_s22 = sphi %s1471_s22, %s2199_s22   ;;  %s1405_s21 = sphi %s1469_s21, %s2198_s21   ;;  %s1401_s20 = sphi %s1467_s20, %s2197_s20   ;;  %s1397_s19 = sphi %s1465_s19, %s2196_s19   ;;  %s1393_s18 = sphi %s1463_s18, %s2195_s18  }
   0xd   : > { %s30_s28 = sadd.s32 1, %s1413_s23  ;;  %s33_s29 = sadd.s32 1, %s1417_s24 }
   0xe   : > { %p31_p0 = scmp.ge.s32.totalorder %s30_s28, 2  ;;  %s152_s30 = sadd.s32 1, %s1401_s20 }
   0xf   : > { %p162_p1 = scmp.ne.s32.totalorder %s1401_s20, %s1397_s19  ;;  %p163_p2 = scmp.eq.s32.totalorder %s1043_s26, 3 }
  0x10   : > { %s2203_s28 = smov (%p31_p0, %s30_s28), 0  ;;  %s2205_s29 = smov (!%p31_p0, %s33_s29), %s1417_s24 }
  0x11   : > { %s148_s6 = ssub.s32 %s1413_s23, %s2203_s28  ;;  %p1515_p3 = por %p163_p2, %p162_p1 }
  0x12   : > { %p35_p4 = scmp.ge.s32.totalorder %s2205_s29, 2  ;;  %p168_p5 = scmp.ne.s32.totalorder %s1397_s19, %s1393_s18 }
  0x13   : > { %s2172_s7 = scalar_select %p1515_p3, 1, 0 }
  0x14   : > { %p169_p6 = scmp.eq.s32.totalorder %s1044_s27, 3  ;;  %p1045_p7 = scmp.ge.s32.totalorder %s1421_s25, 1 }
  0x15   : > { %s2207_s29 = smov (%p35_p4, %s2205_s29), 0  ;;  %p176_p9 = scmp.lt.s32.totalorder %s1421_s25, 5 }
  0x16   : > { %p1524_p8 = por %p169_p6, %p168_p5  ;;  %s147_s9 = ssub.s32 %s1417_s24, %s2207_s29 }
  0x17   : > { %s149_s10 = sor.u32 %s148_s6, %s147_s9  ;;  %p1531_p10 = pnand %p1045_p7, %p176_p9 }
  0x18   : > { %s2173_s8 = scalar_select %p1524_p8, 1, 0 }
  0x19   : > { %s2174_s11 = scalar_select %p1531_p10, 1, 0 }
  0x1a   : > { %p150_p11 = scmp.eq.s32.totalorder %s149_s10, 0  ;;  %p1535_p12 = scmp.eq.s32.totalorder %s1043_s26, 0 }
  0x1b   : > { %p1158_p13 = pneg %p1531_p10  ;;  %s2176_s2 = sld [smem:[#allocation17_spill]] }
  0x1c   : > { %s2175_s12 = scalar_select %p1535_p12, 1, 0 }
  0x1d   : > { %s1545_s16 = scalar_select %p150_p11, %s1401_s20, %s152_s30  }
  0x1e   : > { %p1549_p0 = pnand %p1535_p12, %p1158_p13 }
  0x20   : > { %p1259_p2 = pneg %p1549_p0 }
  0x21   : > { %s200_s15 = sshll.u32 %s2176_s2, 4  ;;  %s201_s15 = int_to_ptr.vmem [resolvable:$true] %s200_s15 }
  0x22   : > { %s1257_s26 = scalar_lea.vmem %s201_s15, 16  ;;  %p1265_p6 = scmp.lt.s32.totalorder %s201_s15, %s201_s15 }
  0x23   : > { %p1258_p1 = scmp.ne.s32.totalorder %s201_s15, %s1257_s26  ;;  %p1266_p7 = scmp.lt.s32.totalorder %s1257_s26, %s1257_s26 }
  0x25   : > { %p1260_p4 = pnand %p1259_p2, %p1258_p1  ;;  %p1267_p9 = por %p1266_p7, %p1265_p6 }
  0x27   : > { %p1261_p5 = pneg %p1260_p4 }
  0x29   : > { %p1268_p11 = pnand %p1267_p9, %p1261_p5 }
  0x2b   : > { %1271 = shalt.err (!%p1268_p11)
}
  0x2c   : > { %s1423_s27 = smov [#allocation5]   ;;  %s2178_s1 = sld [smem:[#allocation16_spill]] }
  0x2d   : > { %1164 = dma.vmem_to_smem (!%p1549_p0), %s201_s15, 16, %s1423_s27, [#allocation6]  }
  0x2e   : > { %s211_s14 = sshll.u32 %s2160_s3, 4  ;;  %s212_s14 = int_to_ptr.vmem [resolvable:$true] %s211_s14 }
  0x32   : > { %s189_s9 = sshll.u32 %s2178_s1, 4  ;;  %s190_s9 = int_to_ptr.vmem [resolvable:$true] %s189_s9 }
  0x33   : > { %s1272_s2 = scalar_lea.vmem %s190_s9, 64  ;;  %p1280_p5 = scmp.lt.s32.totalorder %s190_s9, %s190_s9 }
  0x34   : > { %p1273_p13 = scmp.ne.s32.totalorder %s190_s9, %s1272_s2  ;;  %p1281_p6 = scmp.lt.s32.totalorder %s1272_s2, %s1272_s2 }
  0x36   : > { %p1275_p1 = pnand %p1273_p13, %p1259_p2  ;;  %p1282_p7 = por %p1281_p6, %p1280_p5 }
  0x38   : > { %p1276_p4 = pneg %p1275_p1 }
  0x3a   : > { %p1283_p9 = pnand %p1282_p7, %p1276_p4 }
  0x3c   : > { %1286 = shalt.err (!%p1283_p9)
}
  0x3d   : > { %s1424_s15 = smov [#allocation2]   ;;  %s1287_s26 = scalar_lea.vmem %s212_s14, 64 }
  0x3e   : > { %1161 = dma.vmem_to_smem (!%p1549_p0), %s190_s9, 64, %s1424_s15, [#allocation4]  }
  0x3f   : > { %p1288_p11 = scmp.ne.s32.totalorder %s212_s14, %s1287_s26  ;;  %p1295_p12 = scmp.lt.s32.totalorder %s212_s14, %s212_s14 }
  0x40   : > { %p1296_p13 = scmp.lt.s32.totalorder %s1287_s26, %s1287_s26 }
  0x41   : > { %p1290_p8 = pnand %p1288_p11, %p1259_p2 }
  0x42   : > { %p1297_p1 = por %p1296_p13, %p1295_p12 }
  0x43   : > { %p1291_p3 = pneg %p1290_p8 }
  0x45   : > { %p1298_p10 = pnand %p1297_p1, %p1291_p3 }
  0x47   : > { %1301 = shalt.err (!%p1298_p10)
}
  0x48   : > { %s1425_s2 = smov [#allocation7]   ;;  %s222_s6 = sshll.u32 %s2161_s4, 4  ;;  %s223_s6 = int_to_ptr.vmem [resolvable:$true] %s222_s6 }
  0x49   : > { %1167 = dma.vmem_to_smem (!%p1549_p0), %s212_s14, 64, %s1425_s2, [#allocation6]  }
  0x4a   : > { %s1302_s9 = scalar_lea.vmem %s223_s6, 16  ;;  %p1310_p6 = scmp.lt.s32.totalorder %s223_s6, %s223_s6 }
  0x4b   : > { %p1303_p4 = scmp.ne.s32.totalorder %s223_s6, %s1302_s9  ;;  %p1311_p12 = scmp.lt.s32.totalorder %s1302_s9, %s1302_s9 }
  0x4d   : > { %p1305_p8 = pnand %p1303_p4, %p1259_p2  ;;  %p1312_p3 = por %p1311_p12, %p1310_p6 }
  0x4f   : > { %p1306_p5 = pneg %p1305_p8 }
  0x51   : > { %p1313_p10 = pnand %p1312_p3, %p1306_p5 }
  0x53   : > { %1316 = shalt.err (!%p1313_p10)
}
  0x54   : > { %s1426_s10 = smov [#allocation8]   ;;  %p2179_p7 = scmp.ne.s32.totalorder %s2174_s11, 0 }
  0x55   : > { %1170 = dma.vmem_to_smem (!%p1549_p0), %s223_s6, 16, %s1426_s10, [#allocation9]  }
  0x56   : > { %243 = sbr.rel (%p2179_p7) target bundleno = 330 (0x14a), region = 40  ;;  %p2180_p9 = scmp.ne.s32.totalorder (!%p2179_p7), %s2175_s12, 0 }
  0x5b   : > { %1376 = dma.done.wait (%p2180_p9), [#allocation4], 64  }
  0x5c   : > { %1378 = vsyncadd (%p2180_p9), [#allocation4], 4294967232 }
  0x5d   : > { %1380 = dma.done.wait (%p2180_p9), [#allocation6], 80  }
  0x5e   : > { %1382 = vsyncadd (%p2180_p9), [#allocation6], 4294967216 }
  0x5f   : > { %1384 = dma.done.wait (%p2180_p9), [#allocation9], 16  }
  0x60   : > { %1386 = vsyncadd (%p2180_p9), [#allocation9], 4294967280 }
  0x61   : > { %261 = sfence }
  0x62   : > { %p284_p0 = scmp.lt.s32.totalorder %s1409_s22, 1  ;;  %v290_v0 = vlaneseq  ;;  %s1599_s11 = sld [smem:[#allocation2 + $0x100]]  ;;  %vm523_vm12 = vcmask 1046528   ;;  %vm561_vm13 = vcmask 1045504   ;;  %vm599_vm14 = vcmask 130048  }
  0x63   : > { %s1058_s13 = sshll.u32 %s1405_s21, 3  ;;  %s1603_s14 = sld [smem:[#allocation2 + $0x101]]  ;;  %vm367_vm15 = vcmask 122880  }
  0x64   : > { %s285_s17 = scalar_select %p284_p0, %s1409_s22, 1  ;;  %v291_v1 = vshrl.u32 %v290_v0, 7  ;;  %v293_v2 = vstv %s1058_s13  ;;  %v1627_v7 = vand.u32 127, %v290_v0 }
  0x65   : > { %s1605_s26 = sld [smem:[#allocation2 + $0x102]]  ;;  %p2193_p11 = scmp.ne.s32.totalorder %s2172_s7, 0 }
  0x66   : > { %s1139_s15 = smul.u32 96, %s285_s17  ;;  %s1607_s12 = sld [smem:[#allocation2 + $0x103]]  ;;  %v294_v4 = vadd.s32 %v293_v2, %v291_v1  ;;  %v292_v12 = vadd.s32 8, %v291_v1  ;;  %vm304_vm2 = vcmp.ge.s32.totalorder %v1627_v7, 1  ;;  %vm307_vm4 = vcmp.lt.s32.totalorder %v1627_v7, 17 }
  0x67   : > { %s2181_s0 = sld [smem:[#allocation15_spill]] }
  0x68   : > { %s1612_s6 = sld [smem:[#allocation5 + $0x2]]  ;;  %v413_v3 = vstv %s1599_s11  ;;  %vm298_vm0 = vcmp.ge.s32.totalorder %v294_v4, 1  ;;  %vm300_vm1 = vcmp.lt.s32.totalorder %v294_v4, 17  ;;  %v1661_v23 = vadd.s32 %v293_v2, %v292_v12 }
  0x69   : > { %s1617_s10 = sld [smem:[#allocation7 + $0x101]]  ;;  %v417_v11 = vstv %s1603_s14  ;;  %vm1671_vm3 = vmand %vm298_vm0, %vm300_vm1  ;;  %vm365_vm0 = vcmask 130049  }
  0x6a   : > { %s1625_s17 = sld [smem:[#allocation2]]  ;;  %vm1698_vm5 = vmand %vm1671_vm3, %vm304_vm2  ;;  %vm299_vm6 = vcmp.ge.s32.totalorder %v1661_v23, 1  ;;  %vm301_vm7 = vcmp.lt.s32.totalorder %v1661_v23, 17 }
  0x6b   : > { %s1637_s11 = sld [smem:[#allocation2 + $0x1]]  ;;  %v423_v14 = vstv %s1605_s26  ;;  %vm1721_vm8 = vmand %vm1698_vm5, %vm307_vm4 }
  0x6c   : > { %v429_v18 = vstv %s1607_s12  ;;  %s1656_s14 = sld [smem:[#allocation5]]  ;;  %vm303_vm9 = vmand %vm299_vm6, %vm301_vm7 }
  0x6d   : > { %s288_s30 = scalar_lea.vmem %s2181_s0, %s1139_s15  ;;  %s1651_s15 = sld [smem:[#allocation2 + $0x3]]  ;;  %vm1789_vm10 = vmand %vm303_vm9, %vm304_vm2 }
  0x6e   : > { %s1614_s9 = scalar_lea.vmem %s288_s30, %s1058_s13  ;;  %s1641_s13 = sld [smem:[#allocation2 + $0x2]]  ;;  %v435_v26 = vstv %s1612_s6  ;;  %vm1810_vm11 = vmand %vm1789_vm10, %vm307_vm4 }
  0x6f   : > { %v1620_v5 = vld [vmem:[%s1614_s9] sm:$0xff]  ;;  %v1623_v6 = vld [vmem:[%s1614_s9 + $0x18] sm:$0xff]  ;;  %v1630_v8 = vld [vmem:[%s1614_s9 + $0x30] sm:$0xff]  ;;  %s1659_s26 = sld [smem:[#allocation7 + $0x1]]  ;;  %v705_v46 = vstv %s1617_s10 }
  0x70   : > { %v1633_v9 = vld [vmem:[%s1614_s9 + $0x48] sm:$0xff]  ;;  %v414_v10 = vmul.f32 %v413_v3, %v1620_v5  ;;  %v418_v13 = vmul.f32 %v1623_v6, %v417_v11  ;;  %v1647_v16 = vld [vmem:[%s1614_s9 + $0x20] sm:$0x3]  ;;  %v424_v17 = vmul.f32 %v1630_v8, %v423_v14  ;;  %v1664_v24 = vld [vmem:[%s1614_s9 + $0x38] sm:$0x3]  ;;  %v326_v27 = vstv %s1625_s17  ;;  %s1668_s12 = sld [smem:[#allocation2 + $0x180]] }
  0x71   : > { %v1644_v15 = vld [vmem:[%s1614_s9 + $0x8] sm:$0x3]  ;;  %v419_v20 = vmul.f32 %v1647_v16, %v417_v11  ;;  %v430_v22 = vmul.f32 %v1633_v9, %v429_v18  ;;  %v425_v28 = vmul.f32 %v1664_v24, %v423_v14  ;;  %v327_v30 = vmul.f32 %v326_v27, %v1620_v5  ;;  %s1677_s2 = sld [smem:[#allocation2 + $0x181]]  ;;  %v1685_v37 = vld [vmem:[%s1614_s9 + $0x50] sm:$0x3] }
  0x72   : > { %v415_v19 = vmul.f32 %v413_v3, %v1644_v15  ;;  %v420_v21 = vadd.f32 %v418_v13, %v414_v10  ;;  %v330_v31 = vstv %s1637_s11  ;;  %v328_v32 = vmul.f32 %v326_v27, %v1644_v15  ;;  %s1682_s27 = sld [smem:[#allocation2 + $0x182]] }
  0x73   : > { %v331_v35 = vmul.f32 %v1623_v6, %v330_v31  ;;  %v332_v38 = vmul.f32 %v1647_v16, %v330_v31  ;;  %v342_v40 = vstv %s1651_s15  ;;  %s1691_s30 = sld [smem:[#allocation2 + $0x183]]  ;;  %v431_v49 = vmul.f32 %v1685_v37, %v429_v18 }
  0x74   : > { %v426_v25 = vadd.f32 %v424_v17, %v420_v21  ;;  %v421_v33 = vadd.f32 %v419_v20, %v415_v19  ;;  %v336_v36 = vstv %s1641_s13  ;;  %v343_v45 = vmul.f32 %v1633_v9, %v342_v40  ;;  %s1705_s9 = sld [smem:[#allocation5 + $0x3]] }
  0x75   : > { %v337_v39 = vmul.f32 %v1630_v8, %v336_v36  ;;  %v338_v41 = vmul.f32 %v1664_v24, %v336_v36  ;;  %v333_v44 = vadd.f32 %v331_v35, %v327_v30  ;;  %s1710_s17 = sld [smem:[#allocation7 + $0x181]]  ;;  %v334_v47 = vadd.f32 %v332_v38, %v328_v32 }
  0x76   : > { %v432_v34 = vadd.f32 %v430_v22, %v426_v25  ;;  %v344_v48 = vmul.f32 %v1685_v37, %v342_v40  ;;  %v456_v52 = vstv %s1668_s12  ;;  %s1715_s11 = sld [smem:[#allocation2 + $0x80]]  ;;  %v427_v53 = vadd.f32 %v425_v28, %v421_v33 }
  0x77   : > { %v339_v51 = vadd.f32 %v337_v39, %v333_v44  ;;  %v348_v55 = vstv %s1656_s14  ;;  %v457_v56 = vmul.f32 %v456_v52, %v1620_v5  ;;  %v460_v57 = vstv %s1677_s2  ;;  %s1728_s10 = sld [smem:[#allocation2 + $0x81]]  ;;  %s2167_s2 = smov 127  }
  0x78   : > { %v436_v43 = vadd.f32 %v435_v26, %v432_v34  ;;  %v340_v58 = vadd.f32 %v338_v41, %v334_v47  ;;  %v461_v61 = vmul.f32 %v1623_v6, %v460_v57  ;;  %v466_v62 = vstv %s1682_s27  ;;  %s1732_s13 = sld [smem:[#allocation2 + $0x82]] }
  0x79   : > { %v345_v60 = vadd.f32 %v343_v45, %v339_v51  ;;  %v502_v63 = vstv %s1659_s26  ;;  %v467_v0 = vmul.f32 %v1630_v8, %v466_v62  ;;  %v472_v1 = vstv %s1691_s30  ;;  %s1737_s15 = sld [smem:[#allocation2 + $0x83]] }
  0x7a   : > { %v438_v50 = vmax.f32 %v436_v43, 0.0  ;;  %v346_v2 = vadd.f32 %v344_v48, %v340_v58  ;;  %v463_v10 = vadd.f32 %v461_v61, %v457_v56  ;;  %v473_v11 = vmul.f32 %v1633_v9, %v472_v1  ;;  %s1746_s14 = sld [smem:[#allocation5 + $0x1]] }
  0x7b   : > { %v349_v4 = vadd.f32 %v348_v55, %v345_v60  ;;  %s1749_s26 = sld [smem:[#allocation7 + $0x81]]  ;;  %v458_v14 = vmul.f32 %v456_v52, %v1644_v15  ;;  %v462_v17 = vmul.f32 %v1647_v16, %v460_v57  ;;  %v478_v20 = vstv %s1705_s9 }
  0x7c   : > { %v440_v59 = vmin.f32 %v438_v50, 6.0  ;;  %v350_v13 = vadd.f32 %v348_v55, %v346_v2  ;;  %v469_v19 = vadd.f32 %v467_v0, %v463_v10  ;;  %v370_v21 = vstv %s1715_s11  ;;  %s1755_s12 = sld [smem:[#allocation7 + $0x82]] }
  0x7d   : > { %v351_v18 = vmax.f32 %v349_v4, 0.0  ;;  %v371_v22 = vmul.f32 %v370_v21, %v1620_v5  ;;  %v374_v25 = vstv %s1728_s10  ;;  %s1760_s27 = sld [smem:[#allocation7 + $0x2]]  ;;  %v372_v27 = vmul.f32 %v370_v21, %v1644_v15 }
  0x7e   : > { %v1741_v3 = vsel %vm1721_vm8, %v440_v59, 0.0  ;;  %v352_v28 = vmax.f32 %v350_v13, 0.0  ;;  %v475_v30 = vadd.f32 %v473_v11, %v469_v19  ;;  %v375_v31 = vmul.f32 %v1623_v6, %v374_v25  ;;  %s1765_s11 = sld [smem:[#allocation7 + $0x182]] }
  0x7f   : > { %v706_v12 = vmul.f32 %v705_v46, %v1741_v3  ;;  %v353_v29 = vmin.f32 %v351_v18, 6.0  ;;  %v380_v32 = vstv %s1732_s13  ;;  %v386_v34 = vstv %s1737_s15  ;;  %s1785_s10 = sld [smem:[#allocation7 + $0x4]]  ;;  %s2190_s15 = smov 127  }
  0x80   : > { %v381_v33 = vmul.f32 %v1630_v8, %v380_v32  ;;  %v376_v5 = vmul.f32 %v1647_v16, %v374_v25  ;;  %v382_v15 = vmul.f32 %v1664_v24, %v380_v32  ;;  %v479_v35 = vadd.f32 %v478_v20, %v475_v30  ;;  %s1794_s13 = sld [smem:[#allocation7 + $0x84]] }
  0x81   : > { %708 = vrot.lane.b32.xlu1 %v706_v12, %s2167_s2  ;;  %s1769_s2 = sld [smem:[#allocation7 + $0x102]]  ;;  %v1779_v6 = vsel %vm1721_vm8, %v353_v29, 0.0  ;;  %v377_v8 = vadd.f32 %v375_v31, %v371_v22  ;;  %v387_v36 = vmul.f32 %v1633_v9, %v386_v34  ;;  %v433_v23 = vadd.f32 %v431_v49, %v427_v53 }
  0x82   : > { %v503_v38 = vmul.f32 %v502_v63, %v1779_v6  ;;  %v378_v39 = vadd.f32 %v376_v5, %v372_v27  ;;  %v481_v16 = vmax.f32 %v479_v35, 0.0  ;;  %v388_v42 = vmul.f32 %v1685_v37, %v386_v34  ;;  %s1799_s0 = sld [smem:[#allocation7 + $0x184]] }
  0x83   : > { %v383_v40 = vadd.f32 %v381_v33, %v377_v8  ;;  %v464_v9 = vadd.f32 %v462_v17, %v458_v14  ;;  %v392_v43 = vstv %s1746_s14  ;;  %v468_v45 = vmul.f32 %v1664_v24, %v466_v62  ;;  %s1802_s1 = sld [smem:[#allocation7 + $0x104]] }
  0x84   : > { %505 = vrot.lane.b32.xlu0 %v503_v38, %s2190_s15  ;;  %v384_v44 = vadd.f32 %v382_v15, %v378_v39  ;;  %v483_v46 = vmin.f32 %v481_v16, 6.0  ;;  %v805_v47 = vstv %s1710_s17  ;;  %v354_v49 = vmin.f32 %v352_v28, 6.0  ;;  %s1821_s17 = sld [smem:[#allocation7 + $0x85]] }
  0x85   : > { %v389_v48 = vadd.f32 %v387_v36, %v383_v40  ;;  %v605_v50 = vstv %s1749_s26  ;;  %v510_v51 = vstv %s1760_s27  ;;  %v437_v53 = vadd.f32 %v435_v26, %v433_v23  ;;  %s1834_s6 = sld [smem:[#allocation7 + $0x5]] }
  0x86   : > { %v390_v52 = vadd.f32 %v388_v42, %v384_v44  ;;  %v1818_v55 = vsel %vm1721_vm8, %v483_v46, 0.0  ;;  %v470_v58 = vadd.f32 %v468_v45, %v464_v9  ;;  %v613_v59 = vstv %s1755_s12  ;;  %s1843_s30 = sld [smem:[#allocation7 + $0x185]] }
  0x87   : > { %v393_v56 = vadd.f32 %v392_v43, %v389_v48  ;;  %v713_v57 = vstv %s1769_s2  ;;  %v806_v7 = vmul.f32 %v805_v47, %v1818_v55  ;;  %v813_v60 = vstv %s1765_s11  ;;  %s1855_s14 = sld [smem:[#allocation7 + $0x105]] }
  0x88   : > { %v394_v61 = vadd.f32 %v392_v43, %v390_v52  ;;  %v1828_v63 = vsel %vm1810_vm11, %v354_v49, 0.0  ;;  %v530_v26 = vstv %s1785_s10  ;;  %v474_v0 = vmul.f32 %v1685_v37, %v472_v1  ;;  %s1864_s26 = sld [smem:[#allocation7 + $0x87]] }
  0x89   : > { %v395_v62 = vmax.f32 %v393_v56, 0.0  ;;  %808 = vrot.lane.b32.xlu1 %v806_v7, %s2190_s15  ;;  %v511_v2 = vmul.f32 %v510_v51, %v1779_v6  ;;  %v1839_v4 = vmul.f32 %v713_v57, %v1741_v3  ;;  %v439_v11 = vmax.f32 %v437_v53, 0.0  ;;  %s1880_s9 = sld [smem:[#allocation7 + $0x187]] }
  0x8a   : > { %v396_v10 = vmax.f32 %v394_v61, 0.0  ;;  %v814_v13 = vmul.f32 %v813_v60, %v1818_v55  ;;  %v632_v14 = vstv %s1794_s13  ;;  %v476_v17 = vadd.f32 %v474_v0, %v470_v58  ;;  %s1884_s12 = sld [smem:[#allocation7 + $0x107]] }
  0x8b   : > { %v397_v12 = vmin.f32 %v395_v62, 6.0  ;;  %v531_v1 = vmul.f32 %v530_v26, %v1779_v6  ;;  %v532_v18 = vmul.f32 %v530_v26, %v1828_v63  ;;  %v441_v19 = vmin.f32 %v439_v11, 6.0  ;;  %s1896_s2 = sld [smem:[#allocation7 + $0x88]] }
  0x8c   : > { %v398_v37 = vmin.f32 %v396_v10, 6.0  ;;  %v480_v22 = vadd.f32 %v478_v20, %v476_v17  ;;  %v832_v25 = vstv %s1799_s0  ;;  %v732_v27 = vstv %s1802_s1  ;;  %s1872_s0 = sld [smem:[#allocation7 + $0x7]]  ;;  %s1428_s1 = smov 126  }
  0x8d   : > { %v1849_v21 = vsel %vm1721_vm8, %v397_v12, 0.0  ;;  %v1869_v32 = vsel %vm1810_vm11, %v441_v19, 0.0  ;;  %v645_v33 = vstv %s1821_s17  ;;  %v833_v34 = vmul.f32 %v832_v25, %v1818_v55  ;;  %s1903_s27 = sld [smem:[#allocation7 + $0x8]] }
  0x8e   : > { %v606_v28 = vmul.f32 %v605_v50, %v1849_v21  ;;  %v614_v29 = vmul.f32 %v613_v59, %v1849_v21  ;;  %v1861_v30 = vsel %vm1810_vm11, %v398_v37, 0.0  ;;  %v633_v31 = vmul.f32 %v632_v14, %v1849_v21  ;;  %s1907_s11 = sld [smem:[#allocation7 + $0x188]] }
  0x8f   : > { %v634_v54 = vmul.f32 %v632_v14, %v1861_v30  ;;  %v482_v20 = vmax.f32 %v480_v22, 0.0  ;;  %v733_v5 = vmul.f32 %v732_v27, %v1741_v3  ;;  %v734_v15 = vmul.f32 %v732_v27, %v1869_v32  ;;  %s1915_s10 = sld [smem:[#allocation7 + $0x108]] }
  0x90   : > { %608 = vrot.lane.b32.xlu0 %v606_v28, %s2190_s15  ;;  %616 = vrot.lane.b32.xlu1 %v614_v29, %s1428_s1  ;;  %v637_v35 = vrot.slane %v633_v31, 1  ;;  %v543_v38 = vstv %s1834_s6  ;;  %v535_v39 = vrot.slane %v531_v1, 1  ;;  %v536_v23 = vrot.slane %v532_v18, 1  ;;  %s1935_s13 = sld [smem:[#allocation7 + $0x83]] }
  0x91   : > { %v638_v8 = vrot.slane %v634_v54, 1  ;;  %v484_v36 = vmin.f32 %v482_v20, 6.0  ;;  %v646_v16 = vmul.f32 %v645_v33, %v1849_v21  ;;  %v647_v40 = vmul.f32 %v645_v33, %v1861_v30  ;;  %s1938_s17 = sld [smem:[#allocation7 + $0x3]] }
  0x92   : > { %v544_v42 = vmul.f32 %v543_v38, %v1779_v6  ;;  %v545_v9 = vmul.f32 %v543_v38, %v1828_v63  ;;  %v845_v43 = vstv %s1843_s30  ;;  %v837_v45 = vrot.slane %v833_v34, 1  ;;  %s1942_s6 = sld [smem:[#allocation7 + $0x183]] }
  0x93   : > { %v1888_v41 = vsel %vm1810_vm11, %v484_v36, 0.0  ;;  %v737_v46 = vrot.slane %v733_v5, 1  ;;  %v738_v47 = vrot.slane %v734_v15, 1  ;;  %v639_v48 = vsel %vm523_vm12, %v637_v35, %v638_v8  ;;  %s1948_s30 = sld [smem:[#allocation7 + $0x103]] }
  0x94   : > { %513 = vrot.lane.b32.xlu0 %v511_v2, %s1428_s1  ;;  %816 = vrot.lane.b32.xlu1 %v814_v13, %s1428_s1  ;;  %v834_v44 = vmul.f32 %v832_v25, %v1888_v41  ;;  %v846_v49 = vmul.f32 %v845_v43, %v1818_v55  ;;  %v847_v50 = vmul.f32 %v845_v43, %v1888_v41  ;;  %v745_v51 = vstv %s1855_s14  ;;  %s1957_s14 = sld [smem:[#allocation7 + $0x86]] }
  0x95   : > { %v537_v24 = vsel %vm523_vm12, %v535_v39, %v536_v23  ;;  %v650_v53 = vrot.slane %v646_v16, 1  ;;  %v651_v56 = vrot.slane %v647_v40, 1  ;;  %v548_v57 = vrot.slane %v544_v42, 1 }
  0x96   : > { %v838_v52 = vrot.slane %v834_v44, 1  ;;  %v549_v58 = vrot.slane %v545_v9, 1  ;;  %v669_v7 = vstv %s1864_s26  ;;  %v568_v59 = vstv %s1872_s0  ;;  %s1963_s26 = sld [smem:[#allocation7 + $0x6]] }
  0x97   : > { %v739_v60 = vsel %vm523_vm12, %v737_v46, %v738_v47  ;;  %v746_v61 = vmul.f32 %v745_v51, %v1741_v3  ;;  %v747_v62 = vmul.f32 %v745_v51, %v1869_v32  ;;  %v850_v0 = vrot.slane %v846_v49, 1  ;;  %s1975_s0 = sld [smem:[#allocation7 + $0x186]] }
  0x98   : > { %716 = vrot.lane.b32.xlu0 %v1839_v4, %s1428_s1  ;;  %640 = vrot.lane.b32.xlu1 %v639_v48, %s2190_s15  ;;  %v839_v26 = vsel %vm523_vm12, %v837_v45, %v838_v52  ;;  %v851_v2 = vrot.slane %v847_v50, 1  ;;  %v670_v10 = vmul.f32 %v669_v7, %v1849_v21  ;;  %v671_v4 = vmul.f32 %v669_v7, %v1861_v30 }
  0x99   : > { %v569_v11 = vmul.f32 %v568_v59, %v1779_v6  ;;  %v869_v12 = vstv %s1880_s9  ;;  %v769_v13 = vstv %s1884_s12  ;;  %v652_v14 = vsel %vm523_vm12, %v650_v53, %v651_v56  ;;  %s1981_s9 = sld [smem:[#allocation7 + $0x106]] }
  0x9a   : > { %v550_v17 = vsel %vm523_vm12, %v548_v57, %v549_v58  ;;  %v570_v37 = vmul.f32 %v568_v59, %v1828_v63  ;;  %v870_v1 = vmul.f32 %v869_v12, %v1818_v55  ;;  %v750_v18 = vrot.slane %v746_v61, 1  ;;  %s498_s12 = sld [smem:[#allocation7]] }
  0x9b   : > { %v871_v19 = vmul.f32 %v869_v12, %v1888_v41  ;;  %v770_v22 = vmul.f32 %v769_v13, %v1741_v3  ;;  %v682_v25 = vstv %s1896_s2  ;;  %v852_v27 = vsel %vm523_vm12, %v850_v0, %v851_v2  ;;  %s1123_s2 = sld [smem:[#allocation7 + $0x180]] }
  0x9c   : > { %538 = vrot.lane.b32.xlu0 %v537_v24, %s2190_s15  ;;  %840 = vrot.lane.b32.xlu1 %v839_v26, %s2190_s15  ;;  %v751_v28 = vrot.slane %v747_v62, 1  ;;  %v771_v29 = vmul.f32 %v769_v13, %v1869_v32  ;;  %v683_v31 = vmul.f32 %v682_v25, %v1849_v21  ;;  %v674_v54 = vrot.slane %v670_v10, 2 }
  0x9d   : > { %v675_v20 = vrot.slane %v671_v4, 2  ;;  %v573_v33 = vrot.slane %v569_v11, 2  ;;  %v684_v34 = vmul.f32 %v682_v25, %v1861_v30  ;;  %v574_v5 = vrot.slane %v570_v37, 2 }
  0x9e   : > { %v874_v15 = vrot.slane %v870_v1, 2  ;;  %v581_v35 = vstv %s1903_s27  ;;  %v882_v8 = vstv %s1907_s11  ;;  %v875_v36 = vrot.slane %v871_v19, 2  ;;  %s1112_s27 = sld [smem:[#allocation7 + $0x100]] }
  0x9f   : > { %v774_v38 = vrot.slane %v770_v22, 2  ;;  %v582_v39 = vmul.f32 %v581_v35, %v1779_v6  ;;  %v782_v23 = vstv %s1915_s10  ;;  %v775_v16 = vrot.slane %v771_v29, 2  ;;  %s593_s11 = sld [smem:[#allocation8]] }
  0xa0   : > { %740 = vrot.lane.b32.xlu0 %v739_v60, %s2190_s15  ;;  %653 = vrot.lane.b32.xlu1 %v652_v14, %s1428_s1  ;;  %v687_v40 = vrot.slane %v683_v31, 2  ;;  %v688_v42 = vrot.slane %v684_v34, 2  ;;  %v583_v9 = vmul.f32 %v581_v35, %v1828_v63  ;;  %v1952_v43 = vmul.f32 %v882_v8, %v1818_v55  ;;  %s1132_s10 = sld [smem:[#allocation8 + $0x3]] }
  0xa1   : > { %v1955_v44 = vmul.f32 %v882_v8, %v1888_v41  ;;  %v752_v45 = vsel %vm523_vm12, %v750_v18, %v751_v28  ;;  %v1961_v46 = vmul.f32 %v782_v23, %v1741_v3  ;;  %v676_v47 = vsel %vm561_vm13, %v674_v54, %v675_v20 }
  0xa2   : > { %v575_v48 = vsel %vm561_vm13, %v573_v33, %v574_v5  ;;  %v586_v49 = vrot.slane %v582_v39, 2  ;;  %v587_v50 = vrot.slane %v583_v9, 2  ;;  %v876_v51 = vsel %vm561_vm13, %v874_v15, %v875_v36 }
  0xa3   : > { %v776_v24 = vsel %vm561_vm13, %v774_v38, %v775_v16  ;;  %v689_v52 = vsel %vm561_vm13, %v687_v40, %v688_v42  ;;  %v1973_v53 = vmul.f32 %v782_v23, %v1869_v32  ;;  %v887_v56 = vrot.slane %v1952_v43, 2 }
  0xa4   : > { %551 = vrot.lane.b32.xlu0 %v550_v17, %s1428_s1  ;;  %853 = vrot.lane.b32.xlu1 %v852_v27, %s1428_s1  ;;  %v888_v57 = vrot.slane %v1955_v44, 2  ;;  %v621_v58 = vstv %s1935_s13  ;;  %v518_v7 = vstv %s1938_s17  ;;  %v787_v59 = vrot.slane %v1961_v46, 2  ;;  %s281_s13 = sand.u32 1, %s1397_s19   ;;  %s2063_s17 = sld [smem:[#allocation8 + $0x2]] }
  0xa5   : > { %v622_v60 = vmul.f32 %v621_v58, %v1849_v21  ;;  %v623_v61 = vmul.f32 %v621_v58, %v1861_v30  ;;  %v519_v62 = vmul.f32 %v518_v7, %v1779_v6  ;;  %v588_v26 = vsel %vm561_vm13, %v586_v49, %v587_v50 }
  0xa6   : > { %v520_v0 = vmul.f32 %v518_v7, %v1828_v63  ;;  %v821_v2 = vstv %s1942_s6  ;;  %v721_v10 = vstv %s1948_s30  ;;  %v658_v22 = vstv %s1957_s14  ;;  %s1056_s6 = sshll.u32 %s281_s13, 6  ;;  %s1135_s14 = sshll.u32 %s1409_s22, 4 }
  0xa7   : > { %v626_v4 = vrot.slane %v622_v60, 1  ;;  %v627_v11 = vrot.slane %v623_v61, 1  ;;  %v524_v12 = vrot.slane %v519_v62, 1  ;;  %v822_v13 = vmul.f32 %v821_v2, %v1818_v55  ;;  %s2068_s30 = scalar_lea.vmem [#allocation10], %s1056_s6 }
  0xa8   : > { %753 = vrot.lane.b32.xlu0 %v752_v45, %s1428_s1  ;;  %677 = vrot.lane.b32.xlu1 %v676_v47, %s2190_s15  ;;  %v525_v14 = vrot.slane %v520_v0, 1  ;;  %v823_v17 = vmul.f32 %v821_v2, %v1888_v41  ;;  %v722_v37 = vmul.f32 %v721_v10, %v1741_v3  ;;  %v723_v1 = vmul.f32 %v721_v10, %v1869_v32 }
  0xa9   : > { %v1998_v18 = vsel %vm523_vm12, %v626_v4, %v627_v11  ;;  %v826_v19 = vrot.slane %v822_v13, 1  ;;  %v556_v25 = vstv %s1963_s26  ;;  %v659_v54 = vmul.f32 %v658_v22, %v1849_v21  ;;  %s913_s26 = sadd.s32 %s1405_s21, %s1135_s14 }
  0xaa   : > { %v2005_v27 = vsel %vm523_vm12, %v524_v12, %v525_v14  ;;  %v827_v28 = vrot.slane %v823_v17, 1  ;;  %v726_v29 = vrot.slane %v722_v37, 1  ;;  %v727_v31 = vrot.slane %v723_v1, 1  ;;  %s1136_s22 = sshll.u32 %s913_s26, 7 }
  0xab   : > { %v660_v20 = vmul.f32 %v658_v22, %v1861_v30  ;;  %v557_v33 = vmul.f32 %v556_v25, %v1779_v6  ;;  %v558_v34 = vmul.f32 %v556_v25, %v1828_v63  ;;  %v858_v35 = vstv %s1975_s0  ;;  %s916_s0 = sshll.u32 %s2068_s30, 4  ;;  %s2100_s0 = int_to_ptr.vmem [resolvable:$true] %s916_s0 }
  0xac   : > { %576 = vrot.lane.b32.xlu0 %v575_v48, %s2190_s15  ;;  %877 = vrot.lane.b32.xlu1 %v876_v51, %s2190_s15  ;;  %v828_v5 = vsel %vm523_vm12, %v826_v19, %v827_v28  ;;  %v2013_v15 = vsel %vm523_vm12, %v726_v29, %v727_v31  ;;  %v758_v8 = vstv %s1981_s9  ;;  %v663_v36 = vrot.slane %v659_v54, 2 }
  0xad   : > { %v664_v38 = vrot.slane %v660_v20, 2  ;;  %v562_v39 = vrot.slane %v557_v33, 2  ;;  %v563_v23 = vrot.slane %v558_v34, 2  ;;  %v788_v16 = vrot.slane %v1973_v53, 2 }
  0xae   : > { %v859_v40 = vmul.f32 %v858_v35, %v1818_v55  ;;  %v860_v42 = vmul.f32 %v858_v35, %v1888_v41  ;;  %v759_v9 = vmul.f32 %v758_v8, %v1741_v3  ;;  %v889_v43 = vsel %vm561_vm13, %v887_v56, %v888_v57 }
  0xaf   : > { %v665_v44 = vsel %vm561_vm13, %v663_v36, %v664_v38  ;;  %v2026_v45 = vsel %vm561_vm13, %v562_v39, %v563_v23  ;;  %v760_v46 = vmul.f32 %v758_v8, %v1869_v32  ;;  %v499_v57 = vstv %s498_s12  ;;  %s2106_s12 = scalar_lea.sflag [#allocation3], %s281_s13 }
  0xb0   : > { %777 = vrot.lane.b32.xlu0 %v776_v24, %s2190_s15  ;;  %690 = vrot.lane.b32.xlu1 %v689_v52, %s1428_s1  ;;  %v863_v47 = vrot.slane %v859_v40, 2  ;;  %v864_v48 = vrot.slane %v860_v42, 2  ;;  %v763_v49 = vrot.slane %v759_v9, 2  ;;  %v789_v24 = vsel %vm561_vm13, %v787_v59, %v788_v16 }
  0xb1   : > { %v764_v50 = vrot.slane %v760_v46, 2  ;;  %v802_v58 = vstv %s1123_s2  ;;  %v500_v7 = vmul.f32 %v499_v57, %v1779_v6  ;;  %v702_v14 = vstv %s1112_s27  ;;  %s1317_s2 = scalar_lea.vmem %s2100_s0, 1024  ;;  %s1429_s27 = smov [#allocation10]  }
  0xb2   : > { %v865_v51 = vsel %vm561_vm13, %v863_v47, %v864_v48  ;;  %v803_v59 = vmul.f32 %v802_v58, %v1818_v55  ;;  %p1318_p2 = scmp.ne.s32.totalorder %s2100_s0, %s1317_s2 }
  0xb3   : > { %v2034_v52 = vsel %vm561_vm13, %v763_v49, %v764_v50  ;;  %v594_v49 = vstv %s593_s11 }
  0xb4   : > { %589 = vrot.lane.b32.xlu0 %v588_v26, %s1428_s1  ;;  %890 = vrot.lane.b32.xlu1 %v889_v43, %s1428_s1  ;;  %p1319_p13 = pnand %p1318_p2, %p2193_p11 }
  0xb6   : > { %p1320_p1 = pneg %p1319_p13 }
  0xb8   : > { %790 = vrot.lane.b32.xlu0 %v789_v24, %s1428_s1  ;;  %361 = vrot.lane.b32.xlu1 %v1828_v63, %s2190_s15  ;;  %s1101_s1 = sld [smem:[#allocation7 + $0x80]] }
  0xbc   : > { %359 = vrot.lane.b32.xlu0 %v1779_v6, %s2190_s15  ;;  %405 = vrot.lane.b32.xlu1 %v1861_v30, %s2190_s15 }
  0xbe   : > { %v602_v56 = vstv %s1101_s1  ;;  %s2098_s1 = scalar_lea.hbm %s2162_s5, %s1136_s22 }
  0xc0   : > { %403 = vrot.lane.b32.xlu0 %v1849_v21, %s2190_s15  ;;  %448 = vrot.lane.b32.xlu1 %v1869_v32, %s2190_s15  ;;  %v603_v32 = vmul.f32 %v602_v56, %v1849_v21 }
  0xc4   : > { %446 = vrot.lane.b32.xlu0 %v1741_v3, %s2190_s15  ;;  %491 = vrot.lane.b32.xlu1 %v1888_v41, %s2190_s15 }
  0xc8   : > { %489 = vrot.lane.b32.xlu0 %v1818_v55, %s2190_s15  ;;  %v703_v55 = vmul.f32 %v702_v14, %v1741_v3  ;;  %s1110_s15 = sld [smem:[#allocation8 + $0x1]] }
  0xce   : > { %v695_v43 = vstv %s1110_s15  ;;  %s1321_s15 = sshll.u32 %s1429_s27, 4  ;;  %s1322_s15 = int_to_ptr.vmem [resolvable:$false] %s1321_s15 }
  0xcf   : > { %s1323_s11 = scalar_lea.vmem %s1322_s15, 2048  ;;  %p1324_p4 = scmp.lt.s32.totalorder %s2100_s0, %s1322_s15 }
  0xd0   : > { %p1325_p8 = scmp.lt.s32.totalorder %s1323_s11, %s1317_s2 }
  0xd2   : > { %p1326_p5 = por %p1325_p8, %p1324_p4 }
  0xd4   : > { %p1327_p6 = pnand %p1326_p5, %p1320_p1 }
  0xf3   : > { %v709_v63 = vpop.permute.xlu1 %708 }
  0xf4   : > { %v711_v19 = vadd.f32 %v709_v63, %v703_v55 }
  0xf6   : > { %v506_v30 = vpop.permute.xlu0 %505 }
  0xf7   : > { %v508_v62 = vadd.f32 %v506_v30, %v500_v7 }
  0xfb   : > { %v809_v53 = vpop.permute.xlu1 %808 }
  0xfc   : > { %v811_v26 = vadd.f32 %v809_v53, %v803_v59 }
 0x102   : > { %v609_v41 = vpop.permute.xlu0 %608  ;;  %v617_v60 = vpop.permute.xlu1 %616 }
 0x103   : > { %v611_v61 = vadd.f32 %v609_v41, %v603_v32  ;;  %v795_v32 = vstv %s2063_s17 }
 0x105   : > { %v619_v0 = vadd.f32 %v617_v60, %v611_v61 }
 0x106   : > { %v514_v2 = vpop.permute.xlu0 %513  ;;  %v817_v10 = vpop.permute.xlu1 %816 }
 0x107   : > { %v516_v4 = vadd.f32 %v514_v2, %v508_v62  ;;  %v819_v11 = vadd.f32 %v817_v10, %v811_v26  ;;  %v630_v12 = vadd.f32 %v1998_v18, %v619_v0 }
 0x109   : > { %v528_v13 = vadd.f32 %v2005_v27, %v516_v4  ;;  %v830_v21 = vadd.f32 %v828_v5, %v819_v11 }
 0x10a   : > { %v717_v6 = vpop.permute.xlu0 %716  ;;  %v641_v17 = vpop.permute.xlu1 %640 }
 0x10b   : > { %v643_v22 = vadd.f32 %v641_v17, %v630_v12  ;;  %v719_v29 = vadd.f32 %v717_v6, %v711_v19 }
 0x10d   : > { %v730_v27 = vadd.f32 %v2013_v15, %v719_v29 }
 0x10e   : > { %v539_v37 = vpop.permute.xlu0 %538  ;;  %v841_v1 = vpop.permute.xlu1 %840 }
 0x10f   : > { %v541_v54 = vadd.f32 %v539_v37, %v528_v13  ;;  %v843_v20 = vadd.f32 %v841_v1, %v830_v21 }
 0x112   : > { %v741_v25 = vpop.permute.xlu0 %740  ;;  %v654_v28 = vpop.permute.xlu1 %653 }
 0x113   : > { %v656_v31 = vadd.f32 %v654_v28, %v643_v22  ;;  %v743_v8 = vadd.f32 %v741_v25, %v730_v27 }
 0x115   : > { %v667_v33 = vadd.f32 %v665_v44, %v656_v31 }
 0x116   : > { %v552_v18 = vpop.permute.xlu0 %551  ;;  %v854_v34 = vpop.permute.xlu1 %853 }
 0x117   : > { %v554_v5 = vadd.f32 %v552_v18, %v541_v54  ;;  %v856_v35 = vadd.f32 %v854_v34, %v843_v20 }
 0x119   : > { %v566_v3 = vadd.f32 %v2026_v45, %v554_v5  ;;  %v867_v36 = vadd.f32 %v865_v51, %v856_v35  ;;  %v895_v51 = vstv %s1132_s10 }
 0x11a   : > { %v754_v38 = vpop.permute.xlu0 %753  ;;  %v678_v39 = vpop.permute.xlu1 %677 }
 0x11b   : > { %v756_v23 = vadd.f32 %v754_v38, %v743_v8  ;;  %v680_v9 = vadd.f32 %v678_v39, %v667_v33 }
 0x11d   : > { %v767_v16 = vadd.f32 %v2034_v52, %v756_v23 }
 0x11e   : > { %v577_v40 = vpop.permute.xlu0 %576  ;;  %v878_v42 = vpop.permute.xlu1 %877 }
 0x11f   : > { %v579_v46 = vadd.f32 %v577_v40, %v566_v3  ;;  %v880_v47 = vadd.f32 %v878_v42, %v867_v36 }
 0x122   : > { %v778_v15 = vpop.permute.xlu0 %777  ;;  %v691_v44 = vpop.permute.xlu1 %690 }
 0x123   : > { %v693_v45 = vadd.f32 %v691_v44, %v680_v9  ;;  %v780_v53 = vadd.f32 %v778_v15, %v767_v16 }
 0x125   : > { %v696_v48 = vadd.f32 %v695_v43, %v693_v45 }
 0x126   : > { %v590_v50 = vpop.permute.xlu0 %589  ;;  %v891_v24 = vpop.permute.xlu1 %890 }
 0x127   : > { %v697_v52 = vmax.f32 %v696_v48, 0.0  ;;  %v592_v63 = vadd.f32 %v590_v50, %v579_v46  ;;  %v893_v30 = vadd.f32 %v891_v24, %v880_v47 }
 0x129   : > { %v698_v56 = vmin.f32 %v697_v52, 6.0  ;;  %v595_v57 = vadd.f32 %v594_v49, %v592_v63  ;;  %v896_v58 = vadd.f32 %v895_v51, %v893_v30 }
 0x12a   : > { %v791_v7 = vpop.permute.xlu0 %790  ;;  %v362_v59 = vpop.permute.xlu1 %361 }
 0x12b   : > { %1111 = vst.msk [vmem:[%s2068_s30 + $0x28] sm:$0xff] %vm599_vm14, %v698_v56  ;;  %v596_v41 = vmax.f32 %v595_v57, 0.0  ;;  %v897_v60 = vmax.f32 %v896_v58, 0.0  ;;  %v793_v61 = vadd.f32 %v791_v7, %v780_v53 }
 0x12c   : > { %368 = vst.msk [vmem:[%s2068_s30 + $0x7] sm:$0x1] %vm367_vm15, %v362_v59 }
 0x12d   : > { %v597_v62 = vmin.f32 %v596_v41, 6.0  ;;  %v898_v26 = vmin.f32 %v897_v60, 6.0  ;;  %v796_v0 = vadd.f32 %v795_v32, %v793_v61 }
 0x12e   : > { %v360_v2 = vpop.permute.xlu0 %359  ;;  %v406_v10 = vpop.permute.xlu1 %405 }
 0x12f   : > { %1100 = vst.msk [vmem:[%s2068_s30 + $0x20] sm:$0xff] %vm599_vm14, %v597_v62  ;;  %1133 = vst.msk [vmem:[%s2068_s30 + $0x38] sm:$0xff] %vm599_vm14, %v898_v26  ;;  %v797_v4 = vmax.f32 %v796_v0, 0.0 }
 0x130   : > { %366 = vst.msk [vmem:[%s2068_s30 - $0x1] sm:$0xfe] %vm365_vm0, %v360_v2 }
 0x131   : > { %1077 = vst.msk [vmem:[%s2068_s30 + $0xf] sm:$0x1] %vm367_vm15, %v406_v10  ;;  %v798_v11 = vmin.f32 %v797_v4, 6.0 }
 0x132   : > { %v404_v12 = vpop.permute.xlu0 %403  ;;  %v449_v13 = vpop.permute.xlu1 %448 }
 0x133   : > { %1122 = vst.msk [vmem:[%s2068_s30 + $0x30] sm:$0xff] %vm599_vm14, %v798_v11 }
 0x134   : > { %1076 = vst.msk [vmem:[%s2068_s30 + $0x7] sm:$0xfe] %vm365_vm0, %v404_v12 }
 0x135   : > { %1084 = vst.msk [vmem:[%s2068_s30 + $0x17] sm:$0x1] %vm367_vm15, %v449_v13 }
 0x136   : > { %v447_v21 = vpop.permute.xlu0 %446  ;;  %v492_v14 = vpop.permute.xlu1 %491 }
 0x137   : > { %1083 = vst.msk [vmem:[%s2068_s30 + $0xf] sm:$0xfe] %vm365_vm0, %v447_v21 }
 0x138   : > { %1091 = vst.msk [vmem:[%s2068_s30 + $0x1f] sm:$0x1] %vm367_vm15, %v492_v14 }
 0x13a   : > { %v490_v6 = vpop.permute.xlu0 %489 }
 0x13b   : > { %1090 = vst.msk [vmem:[%s2068_s30 + $0x17] sm:$0xfe] %vm365_vm0, %v490_v6 }
 0x13c   : > { %1330 = shalt.err (!%p1327_p6)
}
 0x13d   : > { %s1331_s10 = scalar_lea.hbm %s2098_s1, 1024  ;;  %s1335_s6 = scalar_lea.hbm %s2162_s5, 4096 }
 0x13e   : > { %p1332_p12 = scmp.ne.s32.totalorder %s2098_s1, %s1331_s10  ;;  %p1336_p7 = scmp.lt.s32.totalorder %s2098_s1, %s2162_s5 }
 0x13f   : > { %p1337_p9 = scmp.lt.s32.totalorder %s1335_s6, %s1331_s10 }
 0x140   : > { %p1333_p3 = pnand %p1332_p12, %p2193_p11 }
 0x141   : > { %p1338_p0 = por %p1337_p9, %p1336_p7 }
 0x142   : > { %p1334_p10 = pneg %p1333_p3 }
 0x144   : > { %p1339_p2 = pnand %p1338_p0, %p1334_p10 }
 0x146   : > { %1342 = shalt.err (!%p1339_p2)
}
 0x147   : > { %s1430_s26 = smov 128   ;;  %s1431_s22 = smov 256  }
 0x148   : > { %s1432_s9 = smov 8  }
 0x149   : > { %1156 = dma.vmem_to_hbm [thread:$0]  (%p2193_p11), %s2100_s0, 1024, %s2098_s1, %s2106_s12, %s1430_s26, %s1431_s22, %s1432_s9  }
 0x14a PF: > { %p1183_p13 = scmp.ge.s32.totalorder %s1421_s25, 2  ;;  %s931_s21 = sand.u32 1, %s1393_s18  }
 0x14b   : > { %p2194_p1 = scmp.ne.s32.totalorder %s2173_s8, 0  ;;  %s932_s2 = scalar_lea.sflag [#allocation3], %s931_s21 }
 0x14d   : > { %p1172_p4 = pnand %p1183_p13, %p2194_p1 }
 0x14f   : > { %p1173_p8 = pneg %p1172_p4 }
 0x151   : > { %1388 = dma.done.wait (%p1173_p8), %s932_s2, 1024  }
 0x152   : > { %1390 = vsyncadd (%p1173_p8), %s932_s2, 4294966272  ;;  %s21_s25 = sadd.s32 1, %s1421_s25   ;;  %s2195_s18 = smov %s1397_s19 }
 0x153   : > { %p18_p5 = scmp.ge.s32.totalorder %s21_s25, 6   ;;  %s2196_s19 = smov %s1401_s20 }
 0x154   : > { %s2197_s20 = smov %s1545_s16  ;;  %s2198_s21 = smov %s1413_s23 }
 0x155   : > { %s2199_s22 = smov %s1417_s24  ;;  %s2200_s23 = smov %s2203_s28 }
 0x156   : > { %s2201_s24 = smov %s2207_s29  ;;  %20 = sbr.rel (!%p18_p5) target bundleno = 12 (0xc), region = 103 }
 0x15b   :  { %937 = vsyncpa [#allocation3], 1 }
 0x15c   :  { %939 = vsyncpa [#allocation3 + $0x1], 1 }
 0x15d   :  { %940 = vsyncpa [#allocation4], 1 }
 0x15e   :  { %942 = vsyncpa [#allocation4 + $0x1], 1 }
 0x15f   :  { %943 = vsyncpa [#allocation6], 1 }
 0x160   :  { %944 = vsyncpa [#allocation9], 1 }

</bundles_post_ra>
